<compile_context>
chip_gen: v5e
topology: v5e:2x2
jax: 0.10.0
libtpu: 0.0.40
codegen_flags: <defaults>
</compile_context>

<pallas_src>
import functools

import jax
import jax.numpy as jnp
from jax.experimental import pallas as pl
from jax.experimental.pallas import tpu as pltpu


# ----------------------------------------------------------------------------
# BlockSpec helpers (index_maps receive (grid_i, agent_id_ref))
# ----------------------------------------------------------------------------
def _full_spec(shape, pipeline_mode=None):
    """Whole array resident in VMEM, same block every grid step."""
    nd = len(shape)

    def idx(i, aid):
        return (0,) * nd

    if pipeline_mode is None:
        return pl.BlockSpec(tuple(shape), idx)
    return pl.BlockSpec(tuple(shape), idx, pipeline_mode=pipeline_mode)


def _batch_spec(shape, tb):
    """Block the leading (batch) dim by tb; replicate the rest."""
    nd = len(shape)

    def idx(i, aid):
        return (i,) + (0,) * (nd - 1)

    return pl.BlockSpec((tb,) + tuple(shape[1:]), idx)


def _agent_spec(shape, pipeline_mode=None):
    """Per-agent tensor (num_agents, ...): DMA only the selected agent's block
    (chosen by the scalar-prefetched agent id); agent dim squeezed so the
    kernel sees a 2-D weight ref."""
    nd = len(shape)

    def idx(i, aid):
        return (aid[0],) + (0,) * (nd - 1)

    block = (pl.Squeezed(),) + tuple(shape[1:])
    if pipeline_mode is None:
        return pl.BlockSpec(block, idx)
    return pl.BlockSpec(block, idx, pipeline_mode=pipeline_mode)


# ----------------------------------------------------------------------------
# fused kernel (operates on per-agent MERGED dense weights)
# ----------------------------------------------------------------------------
def _make_fused_kernel(n_mlp, n_post, hidden):
    H = hidden

    def _ln(x, g, b, eps=1e-5):
        mu = jnp.mean(x, axis=-1, keepdims=True)
        xc = x - mu
        var = jnp.mean(xc * xc, axis=-1, keepdims=True)
        return xc * jax.lax.rsqrt(var + eps) * g + b

    def _dense(x_f32, w_ref, bias):
        # bf16 MXU operands, f32 accumulation.
        return jnp.dot(x_f32.astype(jnp.bfloat16), w_ref[...],
                       preferred_element_type=jnp.float32) + bias

    def kernel(aid_ref, *refs):
        it = iter(refs)
        obs_ref, h_ref, mask_ref, avail_ref = (next(it) for _ in range(4))
        feat_ln_ref = next(it)                                   # (2, obs_dim)
        mlp = [(next(it), next(it)) for _ in range(n_mlp)]       # (W, vec(3,H))
        gru_wih, gru_whh, gru_b_ref, gru_ln_ref = (next(it) for _ in range(4))
        post = [(next(it), next(it)) for _ in range(n_post)]
        act_w, act_b = next(it), next(it)
        act_out, logp_out, h_out = (next(it) for _ in range(3))

        # ---- LoRA_MLPBase: feature LayerNorm, then Linear+ReLU+LN -----------
        fln = feat_ln_ref[...]
        x = _ln(obs_ref[...], fln[0:1, :], fln[1:2, :])
        for w, vec_ref in mlp:
            vec = vec_ref[...]                                   # [b; ln_g; ln_b]
            h = _dense(x, w, vec[0:1, :])
            x = _ln(jnp.maximum(h, 0.0), vec[1:2, :], vec[2:3, :])  # use_ReLU

        # ---- LoRA_RNNLayer: single GRU step (rollout path), masked hidden ---
        # Fused gate matmuls: (tb,H)x(H,3H) per direction; r/z/n are free
        # 128-aligned lane slices.
        # TODO(synk): v6e/v7x-only variant stacking [x|h] into K=256 for the
        # r/z gates (fills the 256-deep MXU) is not implemented.
        h_prev = h_ref[...] * mask_ref[...]
        gb = gru_b_ref[...]                                      # (2, 3H)
        gi = _dense(x, gru_wih, gb[0:1, :])                      # (tb, 3H)
        gh = _dense(h_prev, gru_whh, gb[1:2, :])                 # (tb, 3H)
        r = jax.nn.sigmoid(gi[:, :H] + gh[:, :H])
        z = jax.nn.sigmoid(gi[:, H:2 * H] + gh[:, H:2 * H])
        n = jnp.tanh(gi[:, 2 * H:] + r * gh[:, 2 * H:])
        h_new = (1.0 - z) * n + z * h_prev
        h_out[...] = h_new
        gln = gru_ln_ref[...]
        x = _ln(h_new, gln[0:1, :], gln[1:2, :])   # LayerNorm on features only

        for w, vec_ref in post:
            vec = vec_ref[...]
            h = _dense(x, w, vec[0:1, :])
            x = _ln(jnp.maximum(h, 0.0), vec[1:2, :], vec[2:3, :])

        # ---- LoRA_ACTLayer: Categorical head, deterministic (mode) ----------
        logits = _dense(x, act_w, act_b[...])
        logits = jnp.where(avail_ref[...] > 0.0, logits, jnp.float32(-1e10))

        m = jnp.max(logits, axis=-1, keepdims=True)
        lse = jnp.log(jnp.sum(jnp.exp(logits - m), axis=-1, keepdims=True)) + m
        logp_all = logits - lse

        n_act = logits.shape[-1]
        idx = jax.lax.broadcasted_iota(jnp.int32, logits.shape, 1)
        is_max = logits >= m                     # at least one True per row
        action = jnp.min(jnp.where(is_max, idx, jnp.int32(n_act)),
                         axis=-1, keepdims=True)
        act_out[...] = action
        logp_out[...] = jnp.sum(jnp.where(idx == action, logp_all, 0.0),
                                axis=-1, keepdims=True)

    return kernel


# ----------------------------------------------------------------------------
# full forward (LoRA_R_Actor.forward, deterministic=True) — ONE pallas_call
# ----------------------------------------------------------------------------
def lora_r_actor_forward(merged, obs, rnn_states, masks, available_actions,
                         agent_id, *, batch_block=None):
    """merged: output of merge_lora_params (per-agent dense weights).
    agent_id: int32 array of shape (1,), scalar-prefetched into SMEM so the
    selected agent's merged weights are DMA'd directly into VMEM."""
    N = obs.shape[0]
    H = rnn_states.shape[-1]
    n_act = merged["act"]["W"].shape[-1]
    if available_actions is None:
        available_actions = jnp.ones((N, n_act), jnp.float32)
    n_mlp, n_post = len(merged["mlp"]), len(merged["post"])

    if batch_block is None:
        tb = N                       # v5e/v6e: single TC, keep grid=(1,)
    else:
        tb = batch_block             # v7x: use N//2 to split over both TCs
        assert N % tb == 0 and tb % 16 == 0, \
            "batch_block must divide N and be a multiple of 16 (bf16 sublanes)"
    grid = (N // tb,)
    # grid-invariant weight refs: single-buffer them when batch is blocked
    wmode = pl.Buffered(1) if grid[0] > 1 else None

    # recurrent_N = 1, rollout path (obs.batch == hxs.batch)
    # TODO(synk): sequence-mode unroll and recurrent_N > 1 stacked GRU layers
    # are not implemented (would become a time grid axis with resident weights).
    h_in = rnn_states[:, 0, :]

    arrays, specs = [], []

    def add(a, spec):
        arrays.append(a)
        specs.append(spec)

    add(obs, _batch_spec(obs.shape, tb))
    add(h_in, _batch_spec(h_in.shape, tb))
    add(masks, _batch_spec(masks.shape, tb))
    add(available_actions, _batch_spec(available_actions.shape, tb))
    add(merged["feat_ln"], _full_spec(merged["feat_ln"].shape, wmode))
    for layer in merged["mlp"]:
        add(layer["W"], _agent_spec(layer["W"].shape, wmode))
        add(layer["vec"], _full_spec(layer["vec"].shape, wmode))
    gru = merged["gru"]
    add(gru["Wih"], _agent_spec(gru["Wih"].shape, wmode))
    add(gru["Whh"], _agent_spec(gru["Whh"].shape, wmode))
    add(gru["b"], _full_spec(gru["b"].shape, wmode))
    add(gru["ln"], _full_spec(gru["ln"].shape, wmode))
    for layer in merged["post"]:
        add(layer["W"], _agent_spec(layer["W"].shape, wmode))
        add(layer["vec"], _full_spec(layer["vec"].shape, wmode))
    add(merged["act"]["W"], _agent_spec(merged["act"]["W"].shape, wmode))
    add(merged["act"]["b"], _full_spec(merged["act"]["b"].shape, wmode))

    out_shapes = (jax.ShapeDtypeStruct((N, 1), jnp.int32),
                  jax.ShapeDtypeStruct((N, 1), jnp.float32),
                  jax.ShapeDtypeStruct((N, H), jnp.float32))
    out_specs = (_batch_spec((N, 1), tb),
                 _batch_spec((N, 1), tb),
                 _batch_spec((N, H), tb))

    kernel = _make_fused_kernel(n_mlp, n_post, H)

    # TODO(synk): stochastic sampling (deterministic=False) and per-agent
    # lora_bias_lst are not implemented (mode/argmax path only).
    actions, logp, h_new = pl.pallas_call(
        kernel,
        out_shape=out_shapes,
        grid_spec=pltpu.PrefetchScalarGridSpec(
            num_scalar_prefetch=1,
            grid=grid,
            in_specs=specs,
            out_specs=out_specs,
        ),
        compiler_params=pltpu.CompilerParams(
            dimension_semantics=("parallel",)),   # v7x: both TCs split batch
    )(agent_id, *arrays)

    new_rnn_states = h_new[:, None, :]
    return actions, logp, new_rnn_states


# ----------------------------------------------------------------------------
# LoRA merge: per-agent effective dense weights (inference/rollout path).
# Keeps the adapters factored only in the parameter store (training would
# update the factored A/B and re-merge).
# ----------------------------------------------------------------------------
def merge_lora_params(params, lora_scale):
    sc = float(lora_scale)
    f32, bf16 = jnp.float32, jnp.bfloat16

    def merge_dense(Wt, At, Bt):
        # Wt: (in, out) shared;  At: (A, in, r);  Bt: (A, r, out)
        eff = Wt.astype(f32)[None] + sc * jnp.einsum(
            "air,aro->aio", At.astype(f32), Bt.astype(f32))
        return eff.astype(bf16)

    def merge_layer(layer):
        W = merge_dense(layer["Wt"], layer["At"], layer["Bt"])
        vec = jnp.concatenate(
            [layer["b"], layer["ln_g"], layer["ln_b"]], axis=0)   # (3, out)
        return {"W": W, "vec": vec}

    gru = params["gru"]

    def merge_gru_dir(W_list, A, B_list, b_list):
        eff = [merge_dense(W_list[k], A, B_list[k]) for k in range(3)]  # r,z,n
        W_all = jnp.concatenate(eff, axis=-1)                   # (A, H, 3H)
        b_all = jnp.concatenate(b_list, axis=-1)                # (1, 3H)
        return W_all, b_all

    Wih, b_ih = merge_gru_dir(gru["Wih_t"], gru["Aih_t"], gru["Bih_t"], gru["b_ih"])
    Whh, b_hh = merge_gru_dir(gru["Whh_t"], gru["Ahh_t"], gru["Bhh_t"], gru["b_hh"])

    act = params["act"]
    return {
        "feat_ln": jnp.concatenate([params["feat_ln"]["gamma"],
                                    params["feat_ln"]["beta"]], axis=0),
        "mlp": [merge_layer(l) for l in params["mlp"]],
        "gru": {"Wih": Wih, "Whh": Whh,
                "b": jnp.concatenate([b_ih, b_hh], axis=0),      # (2, 3H)
                "ln": jnp.concatenate([gru["ln_g"], gru["ln_b"]], axis=0)},
        "post": [merge_layer(l) for l in params["post"]],
        "act": {"W": merge_dense(act["Wt"], act["At"], act["Bt"]),
                "b": act["b"]},
    }


# ----------------------------------------------------------------------------
# deterministic parameter construction (synthetic, mirrors the module layout:
# shared dense weights + per-agent LoRA A/B).  Weights pre-transposed (in, out)
# and bf16; biases / LayerNorm params f32.  GRU stored per gate (r, z, n).
# ----------------------------------------------------------------------------
def init_params(key, obs_dim, hidden, action_dim, num_agents,
                layer_N, layer_after_N, lora_rank, lora_alpha):
    keys = iter(jax.random.split(key, 256))
    bf16 = jnp.bfloat16

    def dense(shape, s=0.1, dtype=jnp.float32):
        return (s * jax.random.normal(next(keys), shape, jnp.float32)).astype(dtype)

    def lora_layer(in_dim, out_dim):
        return {
            "Wt": dense((in_dim, out_dim), dtype=bf16),
            "b": dense((1, out_dim), 0.01),
            "At": dense((num_agents, in_dim, lora_rank), dtype=bf16),
            "Bt": dense((num_agents, lora_rank, out_dim), dtype=bf16),
            "ln_g": jnp.ones((1, out_dim), jnp.float32),
            "ln_b": jnp.zeros((1, out_dim), jnp.float32),
        }

    params = {
        "feat_ln": {"gamma": jnp.ones((1, obs_dim), jnp.float32),
                    "beta": jnp.zeros((1, obs_dim), jnp.float32)},
        "mlp": [lora_layer(obs_dim, hidden)]
               + [lora_layer(hidden, hidden) for _ in range(layer_N)],
        "gru": {
            "Wih_t": [dense((hidden, hidden), dtype=bf16) for _ in range(3)],
            "Whh_t": [dense((hidden, hidden), dtype=bf16) for _ in range(3)],
            "b_ih": [dense((1, hidden), 0.01) for _ in range(3)],
            "b_hh": [dense((1, hidden), 0.01) for _ in range(3)],
            "Aih_t": dense((num_agents, hidden, lora_rank), dtype=bf16),
            "Bih_t": [dense((num_agents, lora_rank, hidden), dtype=bf16)
                      for _ in range(3)],
            "Ahh_t": dense((num_agents, hidden, lora_rank), dtype=bf16),
            "Bhh_t": [dense((num_agents, lora_rank, hidden), dtype=bf16)
                      for _ in range(3)],
            "ln_g": jnp.ones((1, hidden), jnp.float32),
            "ln_b": jnp.zeros((1, hidden), jnp.float32),
        },
        "post": [lora_layer(hidden, hidden) for _ in range(layer_after_N)],
        "act": {
            "Wt": dense((hidden, action_dim), 0.01, dtype=bf16),
            "b": jnp.zeros((1, action_dim), jnp.float32),
            "At": dense((num_agents, hidden, lora_rank), dtype=bf16),
            "Bt": dense((num_agents, lora_rank, action_dim), dtype=bf16),
        },
    }
    return params


# ----------------------------------------------------------------------------
if __name__ == "__main__":
    # Small, lane-aligned shapes consistent with the module's forward
    # (1-D obs -> MLP base branch; Discrete action space).
    N = 8                  # rollout batch (threads * agents)
    OBS_DIM = 128          # 1-D observation
    HIDDEN = 128           # args.hidden_size (128-lane aligned)
    ACTION_DIM = 8         # Discrete action space
    NUM_AGENTS = 2
    LAYER_N = 1            # args.layer_N
    LAYER_AFTER_N = 1      # args.layer_after_N
    RECURRENT_N = 1        # args.recurrent_N
    LORA_RANK, LORA_ALPHA = 8, 16

    key = jax.random.PRNGKey(0)
    kp, k1, k2 = jax.random.split(key, 3)

    params = init_params(kp, OBS_DIM, HIDDEN, ACTION_DIM, NUM_AGENTS,
                         LAYER_N, LAYER_AFTER_N, LORA_RANK, LORA_ALPHA)
    merged = merge_lora_params(params, LORA_ALPHA / LORA_RANK)
    merged = jax.block_until_ready(merged)   # merge happens once, outside the kernel

    obs = jax.random.normal(k1, (N, OBS_DIM), jnp.float32)
    rnn_states = jax.random.normal(k2, (N, RECURRENT_N, HIDDEN), jnp.float32)
    masks = jnp.ones((N, 1), jnp.float32).at[0, 0].set(0.0)
    available_actions = jnp.ones((N, ACTION_DIM), jnp.float32).at[:, -1].set(0.0)
    agent_id = jnp.array([1], jnp.int32)

    # v5e/v6e (single TensorCore): batch_block=None -> grid=(1,).
    # v7x with large N: pass batch_block=N//2 (multiple of 16) to use both TCs.
    fwd = jax.jit(functools.partial(lora_r_actor_forward, batch_block=None))

    actions, action_log_probs, new_rnn_states = fwd(
        merged, obs, rnn_states, masks, available_actions, agent_id)

    jax.block_until_ready((actions, action_log_probs, new_rnn_states))
    assert actions.shape == (N, 1) and actions.dtype == jnp.int32
    assert action_log_probs.shape == (N, 1)
    assert new_rnn_states.shape == (N, RECURRENT_N, HIDDEN)
    assert bool(jnp.all(actions >= 0)) and bool(jnp.all(actions < ACTION_DIM - 1))
    assert bool(jnp.all(action_log_probs <= 0.0))
    assert bool(jnp.all(jnp.isfinite(new_rnn_states)))
    print("KERNEL_OK")
</pallas_src>

<mosaic_0001>
module attributes {stable_mosaic.version = 11 : i64} {
  func.func @kernel(%arg0: i32, %arg1: memref<1xi32, #tpu.memory_space<smem>>, %arg2: memref<8x128xf32, #tpu.memory_space<vmem>>, %arg3: memref<8x128xf32, #tpu.memory_space<vmem>>, %arg4: memref<8x1xf32, #tpu.memory_space<vmem>>, %arg5: memref<8x8xf32, #tpu.memory_space<vmem>>, %arg6: memref<2x128xf32, #tpu.memory_space<vmem>>, %arg7: memref<1x128x128xbf16, #tpu.memory_space<vmem>>, %arg8: memref<3x128xf32, #tpu.memory_space<vmem>>, %arg9: memref<1x128x128xbf16, #tpu.memory_space<vmem>>, %arg10: memref<3x128xf32, #tpu.memory_space<vmem>>, %arg11: memref<1x128x384xbf16, #tpu.memory_space<vmem>>, %arg12: memref<1x128x384xbf16, #tpu.memory_space<vmem>>, %arg13: memref<2x384xf32, #tpu.memory_space<vmem>>, %arg14: memref<2x128xf32, #tpu.memory_space<vmem>>, %arg15: memref<1x128x128xbf16, #tpu.memory_space<vmem>>, %arg16: memref<3x128xf32, #tpu.memory_space<vmem>>, %arg17: memref<1x128x8xbf16, #tpu.memory_space<vmem>>, %arg18: memref<1x8xf32, #tpu.memory_space<vmem>>, %arg19: memref<8x1xi32, #tpu.memory_space<vmem>>, %arg20: memref<8x1xf32, #tpu.memory_space<vmem>>, %arg21: memref<8x128xf32, #tpu.memory_space<vmem>>) attributes {dimension_semantics = [#tpu.dimension_semantics<parallel>], iteration_bounds = array<i64: 1>, scalar_prefetch = 1 : i64, scratch_operands = 0 : i64, tpu.core_type = #tpu.core_type<tc>, window_params = [{transform_indices = @transform_0, window_bounds = array<i64: 8, 128>}, {transform_indices = @transform_1, window_bounds = array<i64: 8, 128>}, {transform_indices = @transform_2, window_bounds = array<i64: 8, 1>}, {transform_indices = @transform_3, window_bounds = array<i64: 8, 8>}, {pipeline_mode = #tpu.pipeline_mode<synchronous>, transform_indices = @transform_4, window_bounds = array<i64: 2, 128>}, {transform_indices = @transform_5, window_bounds = array<i64: 1, 128, 128>}, {pipeline_mode = #tpu.pipeline_mode<synchronous>, transform_indices = @transform_6, window_bounds = array<i64: 3, 128>}, {transform_indices = @transform_7, window_bounds = array<i64: 1, 128, 128>}, {pipeline_mode = #tpu.pipeline_mode<synchronous>, transform_indices = @transform_8, window_bounds = array<i64: 3, 128>}, {transform_indices = @transform_9, window_bounds = array<i64: 1, 128, 384>}, {transform_indices = @transform_10, window_bounds = array<i64: 1, 128, 384>}, {pipeline_mode = #tpu.pipeline_mode<synchronous>, transform_indices = @transform_11, window_bounds = array<i64: 2, 384>}, {pipeline_mode = #tpu.pipeline_mode<synchronous>, transform_indices = @transform_12, window_bounds = array<i64: 2, 128>}, {transform_indices = @transform_13, window_bounds = array<i64: 1, 128, 128>}, {pipeline_mode = #tpu.pipeline_mode<synchronous>, transform_indices = @transform_14, window_bounds = array<i64: 3, 128>}, {transform_indices = @transform_15, window_bounds = array<i64: 1, 128, 8>}, {pipeline_mode = #tpu.pipeline_mode<synchronous>, transform_indices = @transform_16, window_bounds = array<i64: 1, 8>}, {transform_indices = @transform_17, window_bounds = array<i64: 8, 1>}, {transform_indices = @transform_18, window_bounds = array<i64: 8, 1>}, {transform_indices = @transform_19, window_bounds = array<i64: 8, 128>}]} {
    %c0 = arith.constant 0 : index
    %c0_0 = arith.constant 0 : index
    %0 = vector.load %arg6[%c0, %c0_0] : memref<2x128xf32, #tpu.memory_space<vmem>>, vector<2x128xf32>
    %c0_1 = arith.constant 0 : index
    %c0_2 = arith.constant 0 : index
    %1 = vector.load %arg2[%c0_1, %c0_2] : memref<8x128xf32, #tpu.memory_space<vmem>>, vector<8x128xf32>
    %2 = vector.extract_strided_slice %0 {offsets = [0, 0], sizes = [1, 128], strides = [1, 1]} : vector<2x128xf32> to vector<1x128xf32>
    %3 = vector.extract_strided_slice %0 {offsets = [1, 0], sizes = [1, 128], strides = [1, 1]} : vector<2x128xf32> to vector<1x128xf32>
    %cst = arith.constant dense<0.000000e+00> : vector<8xf32>
    %4 = vector.multi_reduction <add>, %1, %cst [1] : vector<8x128xf32> to vector<8xf32>
    %5 = vector.shape_cast %4 : vector<8xf32> to vector<8x1xf32>
    %cst_3 = arith.constant 1.280000e+02 : f32
    %6 = vector.broadcast %cst_3 : f32 to vector<8x1xf32>
    %7 = arith.divf %5, %6 : vector<8x1xf32>
    %8 = vector.broadcast %7 : vector<8x1xf32> to vector<8x128xf32>
    %9 = arith.subf %1, %8 : vector<8x128xf32>
    %10 = arith.mulf %9, %9 : vector<8x128xf32>
    %cst_4 = arith.constant dense<0.000000e+00> : vector<8xf32>
    %11 = vector.multi_reduction <add>, %10, %cst_4 [1] : vector<8x128xf32> to vector<8xf32>
    %12 = vector.shape_cast %11 : vector<8xf32> to vector<8x1xf32>
    %cst_5 = arith.constant 1.280000e+02 : f32
    %13 = vector.broadcast %cst_5 : f32 to vector<8x1xf32>
    %14 = arith.divf %12, %13 : vector<8x1xf32>
    %cst_6 = arith.constant 9.99999974E-6 : f32
    %15 = vector.broadcast %cst_6 : f32 to vector<8x1xf32>
    %16 = arith.addf %14, %15 : vector<8x1xf32>
    %17 = math.rsqrt %16 : vector<8x1xf32>
    %18 = vector.broadcast %17 : vector<8x1xf32> to vector<8x128xf32>
    %19 = arith.mulf %9, %18 : vector<8x128xf32>
    %20 = vector.broadcast %2 : vector<1x128xf32> to vector<8x128xf32>
    %21 = arith.mulf %19, %20 : vector<8x128xf32>
    %22 = vector.broadcast %3 : vector<1x128xf32> to vector<8x128xf32>
    %23 = arith.addf %21, %22 : vector<8x128xf32>
    %c0_7 = arith.constant 0 : index
    %c0_8 = arith.constant 0 : index
    %24 = vector.load %arg8[%c0_7, %c0_8] : memref<3x128xf32, #tpu.memory_space<vmem>>, vector<3x128xf32>
    %25 = vector.extract_strided_slice %24 {offsets = [0, 0], sizes = [1, 128], strides = [1, 1]} : vector<3x128xf32> to vector<1x128xf32>
    %26 = arith.truncf %23 : vector<8x128xf32> to vector<8x128xbf16>
    %c0_9 = arith.constant 0 : index
    %c0_10 = arith.constant 0 : index
    %c0_11 = arith.constant 0 : index
    %27 = vector.load %arg7[%c0_9, %c0_10, %c0_11] : memref<1x128x128xbf16, #tpu.memory_space<vmem>>, vector<1x128x128xbf16>
    %28 = vector.shape_cast %27 : vector<1x128x128xbf16> to vector<128x128xbf16>
    %cst_12 = arith.constant dense<0.000000e+00> : vector<8x128xf32>
    %29 = tpu.matmul %26, %28, %cst_12 {dimension_numbers = #tpu.dot_dimension_numbers<[1], [0], [0], [1], [0, 0, 1, 1], [], []>} : vector<8x128xbf16>, vector<128x128xbf16>, vector<8x128xf32> -> vector<8x128xf32>
    %30 = vector.broadcast %25 : vector<1x128xf32> to vector<8x128xf32>
    %31 = arith.addf %29, %30 : vector<8x128xf32>
    %cst_13 = arith.constant 0.000000e+00 : f32
    %32 = vector.broadcast %cst_13 : f32 to vector<8x128xf32>
    %33 = arith.maximumf %31, %32 : vector<8x128xf32>
    %34 = vector.extract_strided_slice %24 {offsets = [1, 0], sizes = [1, 128], strides = [1, 1]} : vector<3x128xf32> to vector<1x128xf32>
    %35 = vector.extract_strided_slice %24 {offsets = [2, 0], sizes = [1, 128], strides = [1, 1]} : vector<3x128xf32> to vector<1x128xf32>
    %cst_14 = arith.constant dense<0.000000e+00> : vector<8xf32>
    %36 = vector.multi_reduction <add>, %33, %cst_14 [1] : vector<8x128xf32> to vector<8xf32>
    %37 = vector.shape_cast %36 : vector<8xf32> to vector<8x1xf32>
    %cst_15 = arith.constant 1.280000e+02 : f32
    %38 = vector.broadcast %cst_15 : f32 to vector<8x1xf32>
    %39 = arith.divf %37, %38 : vector<8x1xf32>
    %40 = vector.broadcast %39 : vector<8x1xf32> to vector<8x128xf32>
    %41 = arith.subf %33, %40 : vector<8x128xf32>
    %42 = arith.mulf %41, %41 : vector<8x128xf32>
    %cst_16 = arith.constant dense<0.000000e+00> : vector<8xf32>
    %43 = vector.multi_reduction <add>, %42, %cst_16 [1] : vector<8x128xf32> to vector<8xf32>
    %44 = vector.shape_cast %43 : vector<8xf32> to vector<8x1xf32>
    %cst_17 = arith.constant 1.280000e+02 : f32
    %45 = vector.broadcast %cst_17 : f32 to vector<8x1xf32>
    %46 = arith.divf %44, %45 : vector<8x1xf32>
    %cst_18 = arith.constant 9.99999974E-6 : f32
    %47 = vector.broadcast %cst_18 : f32 to vector<8x1xf32>
    %48 = arith.addf %46, %47 : vector<8x1xf32>
    %49 = math.rsqrt %48 : vector<8x1xf32>
    %50 = vector.broadcast %49 : vector<8x1xf32> to vector<8x128xf32>
    %51 = arith.mulf %41, %50 : vector<8x128xf32>
    %52 = vector.broadcast %34 : vector<1x128xf32> to vector<8x128xf32>
    %53 = arith.mulf %51, %52 : vector<8x128xf32>
    %54 = vector.broadcast %35 : vector<1x128xf32> to vector<8x128xf32>
    %55 = arith.addf %53, %54 : vector<8x128xf32>
    %c0_19 = arith.constant 0 : index
    %c0_20 = arith.constant 0 : index
    %56 = vector.load %arg10[%c0_19, %c0_20] : memref<3x128xf32, #tpu.memory_space<vmem>>, vector<3x128xf32>
    %57 = vector.extract_strided_slice %56 {offsets = [0, 0], sizes = [1, 128], strides = [1, 1]} : vector<3x128xf32> to vector<1x128xf32>
    %58 = arith.truncf %55 : vector<8x128xf32> to vector<8x128xbf16>
    %c0_21 = arith.constant 0 : index
    %c0_22 = arith.constant 0 : index
    %c0_23 = arith.constant 0 : index
    %59 = vector.load %arg9[%c0_21, %c0_22, %c0_23] : memref<1x128x128xbf16, #tpu.memory_space<vmem>>, vector<1x128x128xbf16>
    %60 = vector.shape_cast %59 : vector<1x128x128xbf16> to vector<128x128xbf16>
    %cst_24 = arith.constant dense<0.000000e+00> : vector<8x128xf32>
    %61 = tpu.matmul %58, %60, %cst_24 {dimension_numbers = #tpu.dot_dimension_numbers<[1], [0], [0], [1], [0, 0, 1, 1], [], []>} : vector<8x128xbf16>, vector<128x128xbf16>, vector<8x128xf32> -> vector<8x128xf32>
    %62 = vector.broadcast %57 : vector<1x128xf32> to vector<8x128xf32>
    %63 = arith.addf %61, %62 : vector<8x128xf32>
    %cst_25 = arith.constant 0.000000e+00 : f32
    %64 = vector.broadcast %cst_25 : f32 to vector<8x128xf32>
    %65 = arith.maximumf %63, %64 : vector<8x128xf32>
    %66 = vector.extract_strided_slice %56 {offsets = [1, 0], sizes = [1, 128], strides = [1, 1]} : vector<3x128xf32> to vector<1x128xf32>
    %67 = vector.extract_strided_slice %56 {offsets = [2, 0], sizes = [1, 128], strides = [1, 1]} : vector<3x128xf32> to vector<1x128xf32>
    %cst_26 = arith.constant dense<0.000000e+00> : vector<8xf32>
    %68 = vector.multi_reduction <add>, %65, %cst_26 [1] : vector<8x128xf32> to vector<8xf32>
    %69 = vector.shape_cast %68 : vector<8xf32> to vector<8x1xf32>
    %cst_27 = arith.constant 1.280000e+02 : f32
    %70 = vector.broadcast %cst_27 : f32 to vector<8x1xf32>
    %71 = arith.divf %69, %70 : vector<8x1xf32>
    %72 = vector.broadcast %71 : vector<8x1xf32> to vector<8x128xf32>
    %73 = arith.subf %65, %72 : vector<8x128xf32>
    %74 = arith.mulf %73, %73 : vector<8x128xf32>
    %cst_28 = arith.constant dense<0.000000e+00> : vector<8xf32>
    %75 = vector.multi_reduction <add>, %74, %cst_28 [1] : vector<8x128xf32> to vector<8xf32>
    %76 = vector.shape_cast %75 : vector<8xf32> to vector<8x1xf32>
    %cst_29 = arith.constant 1.280000e+02 : f32
    %77 = vector.broadcast %cst_29 : f32 to vector<8x1xf32>
    %78 = arith.divf %76, %77 : vector<8x1xf32>
    %cst_30 = arith.constant 9.99999974E-6 : f32
    %79 = vector.broadcast %cst_30 : f32 to vector<8x1xf32>
    %80 = arith.addf %78, %79 : vector<8x1xf32>
    %81 = math.rsqrt %80 : vector<8x1xf32>
    %82 = vector.broadcast %81 : vector<8x1xf32> to vector<8x128xf32>
    %83 = arith.mulf %73, %82 : vector<8x128xf32>
    %84 = vector.broadcast %66 : vector<1x128xf32> to vector<8x128xf32>
    %85 = arith.mulf %83, %84 : vector<8x128xf32>
    %86 = vector.broadcast %67 : vector<1x128xf32> to vector<8x128xf32>
    %87 = arith.addf %85, %86 : vector<8x128xf32>
    %c0_31 = arith.constant 0 : index
    %c0_32 = arith.constant 0 : index
    %88 = vector.load %arg3[%c0_31, %c0_32] : memref<8x128xf32, #tpu.memory_space<vmem>>, vector<8x128xf32>
    %c0_33 = arith.constant 0 : index
    %c0_34 = arith.constant 0 : index
    %89 = vector.load %arg4[%c0_33, %c0_34] : memref<8x1xf32, #tpu.memory_space<vmem>>, vector<8x1xf32>
    %90 = vector.broadcast %89 : vector<8x1xf32> to vector<8x128xf32>
    %91 = arith.mulf %88, %90 : vector<8x128xf32>
    %c0_35 = arith.constant 0 : index
    %c0_36 = arith.constant 0 : index
    %92 = vector.load %arg13[%c0_35, %c0_36] : memref<2x384xf32, #tpu.memory_space<vmem>>, vector<2x384xf32>
    %93 = vector.extract_strided_slice %92 {offsets = [0, 0], sizes = [1, 384], strides = [1, 1]} : vector<2x384xf32> to vector<1x384xf32>
    %94 = arith.truncf %87 : vector<8x128xf32> to vector<8x128xbf16>
    %c0_37 = arith.constant 0 : index
    %c0_38 = arith.constant 0 : index
    %c0_39 = arith.constant 0 : index
    %95 = vector.load %arg11[%c0_37, %c0_38, %c0_39] : memref<1x128x384xbf16, #tpu.memory_space<vmem>>, vector<1x128x384xbf16>
    %96 = vector.shape_cast %95 : vector<1x128x384xbf16> to vector<128x384xbf16>
    %cst_40 = arith.constant dense<0.000000e+00> : vector<8x384xf32>
    %97 = tpu.matmul %94, %96, %cst_40 {dimension_numbers = #tpu.dot_dimension_numbers<[1], [0], [0], [1], [0, 0, 1, 1], [], []>} : vector<8x128xbf16>, vector<128x384xbf16>, vector<8x384xf32> -> vector<8x384xf32>
    %98 = vector.broadcast %93 : vector<1x384xf32> to vector<8x384xf32>
    %99 = arith.addf %97, %98 : vector<8x384xf32>
    %100 = vector.extract_strided_slice %92 {offsets = [1, 0], sizes = [1, 384], strides = [1, 1]} : vector<2x384xf32> to vector<1x384xf32>
    %101 = arith.truncf %91 : vector<8x128xf32> to vector<8x128xbf16>
    %c0_41 = arith.constant 0 : index
    %c0_42 = arith.constant 0 : index
    %c0_43 = arith.constant 0 : index
    %102 = vector.load %arg12[%c0_41, %c0_42, %c0_43] : memref<1x128x384xbf16, #tpu.memory_space<vmem>>, vector<1x128x384xbf16>
    %103 = vector.shape_cast %102 : vector<1x128x384xbf16> to vector<128x384xbf16>
    %cst_44 = arith.constant dense<0.000000e+00> : vector<8x384xf32>
    %104 = tpu.matmul %101, %103, %cst_44 {dimension_numbers = #tpu.dot_dimension_numbers<[1], [0], [0], [1], [0, 0, 1, 1], [], []>} : vector<8x128xbf16>, vector<128x384xbf16>, vector<8x384xf32> -> vector<8x384xf32>
    %105 = vector.broadcast %100 : vector<1x384xf32> to vector<8x384xf32>
    %106 = arith.addf %104, %105 : vector<8x384xf32>
    %107 = vector.extract_strided_slice %99 {offsets = [0, 0], sizes = [8, 128], strides = [1, 1]} : vector<8x384xf32> to vector<8x128xf32>
    %108 = vector.extract_strided_slice %106 {offsets = [0, 0], sizes = [8, 128], strides = [1, 1]} : vector<8x384xf32> to vector<8x128xf32>
    %109 = arith.addf %107, %108 : vector<8x128xf32>
    %110 = arith.negf %109 : vector<8x128xf32>
    %111 = math.exp %110 : vector<8x128xf32>
    %cst_45 = arith.constant 1.000000e+00 : f32
    %112 = vector.broadcast %cst_45 : f32 to vector<8x128xf32>
    %113 = arith.addf %112, %111 : vector<8x128xf32>
    %114 = arith.divf %112, %113 : vector<8x128xf32>
    %115 = vector.extract_strided_slice %99 {offsets = [0, 128], sizes = [8, 128], strides = [1, 1]} : vector<8x384xf32> to vector<8x128xf32>
    %116 = vector.extract_strided_slice %106 {offsets = [0, 128], sizes = [8, 128], strides = [1, 1]} : vector<8x384xf32> to vector<8x128xf32>
    %117 = arith.addf %115, %116 : vector<8x128xf32>
    %118 = arith.negf %117 : vector<8x128xf32>
    %119 = math.exp %118 : vector<8x128xf32>
    %cst_46 = arith.constant 1.000000e+00 : f32
    %120 = vector.broadcast %cst_46 : f32 to vector<8x128xf32>
    %121 = arith.addf %120, %119 : vector<8x128xf32>
    %122 = arith.divf %120, %121 : vector<8x128xf32>
    %123 = vector.extract_strided_slice %99 {offsets = [0, 256], sizes = [8, 128], strides = [1, 1]} : vector<8x384xf32> to vector<8x128xf32>
    %124 = vector.extract_strided_slice %106 {offsets = [0, 256], sizes = [8, 128], strides = [1, 1]} : vector<8x384xf32> to vector<8x128xf32>
    %125 = arith.mulf %114, %124 : vector<8x128xf32>
    %126 = arith.addf %123, %125 : vector<8x128xf32>
    %127 = math.tanh %126 : vector<8x128xf32>
    %cst_47 = arith.constant 1.000000e+00 : f32
    %128 = vector.broadcast %cst_47 : f32 to vector<8x128xf32>
    %129 = arith.subf %128, %122 : vector<8x128xf32>
    %130 = arith.mulf %129, %127 : vector<8x128xf32>
    %131 = arith.mulf %122, %91 : vector<8x128xf32>
    %132 = arith.addf %130, %131 : vector<8x128xf32>
    %c0_48 = arith.constant 0 : index
    %c0_49 = arith.constant 0 : index
    %133 = vector.load %arg21[%c0_48, %c0_49] : memref<8x128xf32, #tpu.memory_space<vmem>>, vector<8x128xf32>
    tpu.vector_store %arg21[%c0_48, %c0_49], %132 {strides = array<i32>} : memref<8x128xf32, #tpu.memory_space<vmem>>, vector<8x128xf32>,
    %c0_50 = arith.constant 0 : index
    %c0_51 = arith.constant 0 : index
    %134 = vector.load %arg14[%c0_50, %c0_51] : memref<2x128xf32, #tpu.memory_space<vmem>>, vector<2x128xf32>
    %135 = vector.extract_strided_slice %134 {offsets = [0, 0], sizes = [1, 128], strides = [1, 1]} : vector<2x128xf32> to vector<1x128xf32>
    %136 = vector.extract_strided_slice %134 {offsets = [1, 0], sizes = [1, 128], strides = [1, 1]} : vector<2x128xf32> to vector<1x128xf32>
    %cst_52 = arith.constant dense<0.000000e+00> : vector<8xf32>
    %137 = vector.multi_reduction <add>, %132, %cst_52 [1] : vector<8x128xf32> to vector<8xf32>
    %138 = vector.shape_cast %137 : vector<8xf32> to vector<8x1xf32>
    %cst_53 = arith.constant 1.280000e+02 : f32
    %139 = vector.broadcast %cst_53 : f32 to vector<8x1xf32>
    %140 = arith.divf %138, %139 : vector<8x1xf32>
    %141 = vector.broadcast %140 : vector<8x1xf32> to vector<8x128xf32>
    %142 = arith.subf %132, %141 : vector<8x128xf32>
    %143 = arith.mulf %142, %142 : vector<8x128xf32>
    %cst_54 = arith.constant dense<0.000000e+00> : vector<8xf32>
    %144 = vector.multi_reduction <add>, %143, %cst_54 [1] : vector<8x128xf32> to vector<8xf32>
    %145 = vector.shape_cast %144 : vector<8xf32> to vector<8x1xf32>
    %cst_55 = arith.constant 1.280000e+02 : f32
    %146 = vector.broadcast %cst_55 : f32 to vector<8x1xf32>
    %147 = arith.divf %145, %146 : vector<8x1xf32>
    %cst_56 = arith.constant 9.99999974E-6 : f32
    %148 = vector.broadcast %cst_56 : f32 to vector<8x1xf32>
    %149 = arith.addf %147, %148 : vector<8x1xf32>
    %150 = math.rsqrt %149 : vector<8x1xf32>
    %151 = vector.broadcast %150 : vector<8x1xf32> to vector<8x128xf32>
    %152 = arith.mulf %142, %151 : vector<8x128xf32>
    %153 = vector.broadcast %135 : vector<1x128xf32> to vector<8x128xf32>
    %154 = arith.mulf %152, %153 : vector<8x128xf32>
    %155 = vector.broadcast %136 : vector<1x128xf32> to vector<8x128xf32>
    %156 = arith.addf %154, %155 : vector<8x128xf32>
    %c0_57 = arith.constant 0 : index
    %c0_58 = arith.constant 0 : index
    %157 = vector.load %arg16[%c0_57, %c0_58] : memref<3x128xf32, #tpu.memory_space<vmem>>, vector<3x128xf32>
    %158 = vector.extract_strided_slice %157 {offsets = [0, 0], sizes = [1, 128], strides = [1, 1]} : vector<3x128xf32> to vector<1x128xf32>
    %159 = arith.truncf %156 : vector<8x128xf32> to vector<8x128xbf16>
    %c0_59 = arith.constant 0 : index
    %c0_60 = arith.constant 0 : index
    %c0_61 = arith.constant 0 : index
    %160 = vector.load %arg15[%c0_59, %c0_60, %c0_61] : memref<1x128x128xbf16, #tpu.memory_space<vmem>>, vector<1x128x128xbf16>
    %161 = vector.shape_cast %160 : vector<1x128x128xbf16> to vector<128x128xbf16>
    %cst_62 = arith.constant dense<0.000000e+00> : vector<8x128xf32>
    %162 = tpu.matmul %159, %161, %cst_62 {dimension_numbers = #tpu.dot_dimension_numbers<[1], [0], [0], [1], [0, 0, 1, 1], [], []>} : vector<8x128xbf16>, vector<128x128xbf16>, vector<8x128xf32> -> vector<8x128xf32>
    %163 = vector.broadcast %158 : vector<1x128xf32> to vector<8x128xf32>
    %164 = arith.addf %162, %163 : vector<8x128xf32>
    %cst_63 = arith.constant 0.000000e+00 : f32
    %165 = vector.broadcast %cst_63 : f32 to vector<8x128xf32>
    %166 = arith.maximumf %164, %165 : vector<8x128xf32>
    %167 = vector.extract_strided_slice %157 {offsets = [1, 0], sizes = [1, 128], strides = [1, 1]} : vector<3x128xf32> to vector<1x128xf32>
    %168 = vector.extract_strided_slice %157 {offsets = [2, 0], sizes = [1, 128], strides = [1, 1]} : vector<3x128xf32> to vector<1x128xf32>
    %cst_64 = arith.constant dense<0.000000e+00> : vector<8xf32>
    %169 = vector.multi_reduction <add>, %166, %cst_64 [1] : vector<8x128xf32> to vector<8xf32>
    %170 = vector.shape_cast %169 : vector<8xf32> to vector<8x1xf32>
    %cst_65 = arith.constant 1.280000e+02 : f32
    %171 = vector.broadcast %cst_65 : f32 to vector<8x1xf32>
    %172 = arith.divf %170, %171 : vector<8x1xf32>
    %173 = vector.broadcast %172 : vector<8x1xf32> to vector<8x128xf32>
    %174 = arith.subf %166, %173 : vector<8x128xf32>
    %175 = arith.mulf %174, %174 : vector<8x128xf32>
    %cst_66 = arith.constant dense<0.000000e+00> : vector<8xf32>
    %176 = vector.multi_reduction <add>, %175, %cst_66 [1] : vector<8x128xf32> to vector<8xf32>
    %177 = vector.shape_cast %176 : vector<8xf32> to vector<8x1xf32>
    %cst_67 = arith.constant 1.280000e+02 : f32
    %178 = vector.broadcast %cst_67 : f32 to vector<8x1xf32>
    %179 = arith.divf %177, %178 : vector<8x1xf32>
    %cst_68 = arith.constant 9.99999974E-6 : f32
    %180 = vector.broadcast %cst_68 : f32 to vector<8x1xf32>
    %181 = arith.addf %179, %180 : vector<8x1xf32>
    %182 = math.rsqrt %181 : vector<8x1xf32>
    %183 = vector.broadcast %182 : vector<8x1xf32> to vector<8x128xf32>
    %184 = arith.mulf %174, %183 : vector<8x128xf32>
    %185 = vector.broadcast %167 : vector<1x128xf32> to vector<8x128xf32>
    %186 = arith.mulf %184, %185 : vector<8x128xf32>
    %187 = vector.broadcast %168 : vector<1x128xf32> to vector<8x128xf32>
    %188 = arith.addf %186, %187 : vector<8x128xf32>
    %c0_69 = arith.constant 0 : index
    %c0_70 = arith.constant 0 : index
    %189 = vector.load %arg18[%c0_69, %c0_70] : memref<1x8xf32, #tpu.memory_space<vmem>>, vector<1x8xf32>
    %190 = arith.truncf %188 : vector<8x128xf32> to vector<8x128xbf16>
    %c0_71 = arith.constant 0 : index
    %c0_72 = arith.constant 0 : index
    %c0_73 = arith.constant 0 : index
    %191 = vector.load %arg17[%c0_71, %c0_72, %c0_73] : memref<1x128x8xbf16, #tpu.memory_space<vmem>>, vector<1x128x8xbf16>
    %192 = vector.shape_cast %191 : vector<1x128x8xbf16> to vector<128x8xbf16>
    %cst_74 = arith.constant dense<0.000000e+00> : vector<8x8xf32>
    %193 = tpu.matmul %190, %192, %cst_74 {dimension_numbers = #tpu.dot_dimension_numbers<[1], [0], [0], [1], [0, 0, 1, 1], [], []>} : vector<8x128xbf16>, vector<128x8xbf16>, vector<8x8xf32> -> vector<8x8xf32>
    %194 = vector.broadcast %189 : vector<1x8xf32> to vector<8x8xf32>
    %195 = arith.addf %193, %194 : vector<8x8xf32>
    %c0_75 = arith.constant 0 : index
    %c0_76 = arith.constant 0 : index
    %196 = vector.load %arg5[%c0_75, %c0_76] : memref<8x8xf32, #tpu.memory_space<vmem>>, vector<8x8xf32>
    %cst_77 = arith.constant 0.000000e+00 : f32
    %197 = vector.broadcast %cst_77 : f32 to vector<8x8xf32>
    %198 = arith.cmpf ogt, %196, %197 : vector<8x8xf32>
    %cst_78 = arith.constant -1.000000e+10 : f32
    %199 = vector.broadcast %cst_78 : f32 to vector<8x8xf32>
    %200 = arith.select %198, %195, %199 : vector<8x8xi1>, vector<8x8xf32>
    %cst_79 = arith.constant dense<0xFF800000> : vector<8xf32>
    %201 = vector.multi_reduction <maximumf>, %200, %cst_79 [1] : vector<8x8xf32> to vector<8xf32>
    %202 = vector.shape_cast %201 : vector<8xf32> to vector<8x1xf32>
    %203 = vector.broadcast %202 : vector<8x1xf32> to vector<8x8xf32>
    %204 = arith.subf %200, %203 : vector<8x8xf32>
    %205 = math.exp %204 : vector<8x8xf32>
    %cst_80 = arith.constant dense<0.000000e+00> : vector<8xf32>
    %206 = vector.multi_reduction <add>, %205, %cst_80 [1] : vector<8x8xf32> to vector<8xf32>
    %207 = vector.shape_cast %206 : vector<8xf32> to vector<8x1xf32>
    %208 = math.log %207 : vector<8x1xf32>
    %209 = arith.addf %208, %202 : vector<8x1xf32>
    %210 = vector.broadcast %209 : vector<8x1xf32> to vector<8x8xf32>
    %211 = arith.subf %200, %210 : vector<8x8xf32>
    %212 = tpu.iota {dimensions = array<i32: 1>} : vector<8x8xi32>
    %213 = vector.broadcast %202 : vector<8x1xf32> to vector<8x8xf32>
    %214 = arith.cmpf oge, %200, %213 : vector<8x8xf32>
    %c8_i32 = arith.constant 8 : i32
    %215 = vector.broadcast %c8_i32 : i32 to vector<8x8xi32>
    %216 = arith.select %214, %212, %215 : vector<8x8xi1>, vector<8x8xi32>
    %cst_81 = arith.constant dense<2147483647> : vector<8xi32>
    %217 = vector.multi_reduction <minsi>, %216, %cst_81 [1] : vector<8x8xi32> to vector<8xi32>
    %218 = vector.shape_cast %217 : vector<8xi32> to vector<8x1xi32>
    %c0_82 = arith.constant 0 : index
    %c0_83 = arith.constant 0 : index
    %219 = vector.load %arg19[%c0_82, %c0_83] : memref<8x1xi32, #tpu.memory_space<vmem>>, vector<8x1xi32>
    tpu.vector_store %arg19[%c0_82, %c0_83], %218 {strides = array<i32>} : memref<8x1xi32, #tpu.memory_space<vmem>>, vector<8x1xi32>,
    %220 = vector.broadcast %218 : vector<8x1xi32> to vector<8x8xi32>
    %221 = arith.cmpi eq, %212, %220 : vector<8x8xi32>
    %cst_84 = arith.constant 0.000000e+00 : f32
    %222 = vector.broadcast %cst_84 : f32 to vector<8x8xf32>
    %223 = arith.select %221, %211, %222 : vector<8x8xi1>, vector<8x8xf32>
    %cst_85 = arith.constant dense<0.000000e+00> : vector<8xf32>
    %224 = vector.multi_reduction <add>, %223, %cst_85 [1] : vector<8x8xf32> to vector<8xf32>
    %225 = vector.shape_cast %224 : vector<8xf32> to vector<8x1xf32>
    %c0_86 = arith.constant 0 : index
    %c0_87 = arith.constant 0 : index
    %226 = vector.load %arg20[%c0_86, %c0_87] : memref<8x1xf32, #tpu.memory_space<vmem>>, vector<8x1xf32>
    tpu.vector_store %arg20[%c0_86, %c0_87], %225 {strides = array<i32>} : memref<8x1xf32, #tpu.memory_space<vmem>>, vector<8x1xf32>,
    return
  }
  func.func @transform_0(%arg0: i32, %arg1: memref<1xi32, #tpu.memory_space<smem>>) -> (i32, i32) {
    %c0_i32 = arith.constant 0 : i32
    %c0_i32_0 = arith.constant 0 : i32
    return %arg0, %c0_i32 : i32, i32
  }
  func.func @transform_1(%arg0: i32, %arg1: memref<1xi32, #tpu.memory_space<smem>>) -> (i32, i32) {
    %c0_i32 = arith.constant 0 : i32
    %c0_i32_0 = arith.constant 0 : i32
    return %arg0, %c0_i32 : i32, i32
  }
  func.func @transform_2(%arg0: i32, %arg1: memref<1xi32, #tpu.memory_space<smem>>) -> (i32, i32) {
    %c0_i32 = arith.constant 0 : i32
    %c0_i32_0 = arith.constant 0 : i32
    return %arg0, %c0_i32 : i32, i32
  }
  func.func @transform_3(%arg0: i32, %arg1: memref<1xi32, #tpu.memory_space<smem>>) -> (i32, i32) {
    %c0_i32 = arith.constant 0 : i32
    %c0_i32_0 = arith.constant 0 : i32
    return %arg0, %c0_i32 : i32, i32
  }
  func.func @transform_4(%arg0: i32, %arg1: memref<1xi32, #tpu.memory_space<smem>>) -> (i32, i32) {
    %c0_i32 = arith.constant 0 : i32
    %c0_i32_0 = arith.constant 0 : i32
    %c0_i32_1 = arith.constant 0 : i32
    return %c0_i32, %c0_i32_0 : i32, i32
  }
  func.func @transform_5(%arg0: i32, %arg1: memref<1xi32, #tpu.memory_space<smem>>) -> (i32, i32, i32) {
    %c0 = arith.constant 0 : index
    %0 = memref.load %arg1[%c0] : memref<1xi32, #tpu.memory_space<smem>>
    %c0_i32 = arith.constant 0 : i32
    %c0_i32_0 = arith.constant 0 : i32
    %c0_i32_1 = arith.constant 0 : i32
    return %0, %c0_i32, %c0_i32_0 : i32, i32, i32
  }
  func.func @transform_6(%arg0: i32, %arg1: memref<1xi32, #tpu.memory_space<smem>>) -> (i32, i32) {
    %c0_i32 = arith.constant 0 : i32
    %c0_i32_0 = arith.constant 0 : i32
    %c0_i32_1 = arith.constant 0 : i32
    return %c0_i32, %c0_i32_0 : i32, i32
  }
  func.func @transform_7(%arg0: i32, %arg1: memref<1xi32, #tpu.memory_space<smem>>) -> (i32, i32, i32) {
    %c0 = arith.constant 0 : index
    %0 = memref.load %arg1[%c0] : memref<1xi32, #tpu.memory_space<smem>>
    %c0_i32 = arith.constant 0 : i32
    %c0_i32_0 = arith.constant 0 : i32
    %c0_i32_1 = arith.constant 0 : i32
    return %0, %c0_i32, %c0_i32_0 : i32, i32, i32
  }
  func.func @transform_8(%arg0: i32, %arg1: memref<1xi32, #tpu.memory_space<smem>>) -> (i32, i32) {
    %c0_i32 = arith.constant 0 : i32
    %c0_i32_0 = arith.constant 0 : i32
    %c0_i32_1 = arith.constant 0 : i32
    return %c0_i32, %c0_i32_0 : i32, i32
  }
  func.func @transform_9(%arg0: i32, %arg1: memref<1xi32, #tpu.memory_space<smem>>) -> (i32, i32, i32) {
    %c0 = arith.constant 0 : index
    %0 = memref.load %arg1[%c0] : memref<1xi32, #tpu.memory_space<smem>>
    %c0_i32 = arith.constant 0 : i32
    %c0_i32_0 = arith.constant 0 : i32
    %c0_i32_1 = arith.constant 0 : i32
    return %0, %c0_i32, %c0_i32_0 : i32, i32, i32
  }
  func.func @transform_10(%arg0: i32, %arg1: memref<1xi32, #tpu.memory_space<smem>>) -> (i32, i32, i32) {
    %c0 = arith.constant 0 : index
    %0 = memref.load %arg1[%c0] : memref<1xi32, #tpu.memory_space<smem>>
    %c0_i32 = arith.constant 0 : i32
    %c0_i32_0 = arith.constant 0 : i32
    %c0_i32_1 = arith.constant 0 : i32
    return %0, %c0_i32, %c0_i32_0 : i32, i32, i32
  }
  func.func @transform_11(%arg0: i32, %arg1: memref<1xi32, #tpu.memory_space<smem>>) -> (i32, i32) {
    %c0_i32 = arith.constant 0 : i32
    %c0_i32_0 = arith.constant 0 : i32
    %c0_i32_1 = arith.constant 0 : i32
    return %c0_i32, %c0_i32_0 : i32, i32
  }
  func.func @transform_12(%arg0: i32, %arg1: memref<1xi32, #tpu.memory_space<smem>>) -> (i32, i32) {
    %c0_i32 = arith.constant 0 : i32
    %c0_i32_0 = arith.constant 0 : i32
    %c0_i32_1 = arith.constant 0 : i32
    return %c0_i32, %c0_i32_0 : i32, i32
  }
  func.func @transform_13(%arg0: i32, %arg1: memref<1xi32, #tpu.memory_space<smem>>) -> (i32, i32, i32) {
    %c0 = arith.constant 0 : index
    %0 = memref.load %arg1[%c0] : memref<1xi32, #tpu.memory_space<smem>>
    %c0_i32 = arith.constant 0 : i32
    %c0_i32_0 = arith.constant 0 : i32
    %c0_i32_1 = arith.constant 0 : i32
    return %0, %c0_i32, %c0_i32_0 : i32, i32, i32
  }
  func.func @transform_14(%arg0: i32, %arg1: memref<1xi32, #tpu.memory_space<smem>>) -> (i32, i32) {
    %c0_i32 = arith.constant 0 : i32
    %c0_i32_0 = arith.constant 0 : i32
    %c0_i32_1 = arith.constant 0 : i32
    return %c0_i32, %c0_i32_0 : i32, i32
  }
  func.func @transform_15(%arg0: i32, %arg1: memref<1xi32, #tpu.memory_space<smem>>) -> (i32, i32, i32) {
    %c0 = arith.constant 0 : index
    %0 = memref.load %arg1[%c0] : memref<1xi32, #tpu.memory_space<smem>>
    %c0_i32 = arith.constant 0 : i32
    %c0_i32_0 = arith.constant 0 : i32
    %c0_i32_1 = arith.constant 0 : i32
    return %0, %c0_i32, %c0_i32_0 : i32, i32, i32
  }
  func.func @transform_16(%arg0: i32, %arg1: memref<1xi32, #tpu.memory_space<smem>>) -> (i32, i32) {
    %c0_i32 = arith.constant 0 : i32
    %c0_i32_0 = arith.constant 0 : i32
    %c0_i32_1 = arith.constant 0 : i32
    return %c0_i32, %c0_i32_0 : i32, i32
  }
  func.func @transform_17(%arg0: i32, %arg1: memref<1xi32, #tpu.memory_space<smem>>) -> (i32, i32) {
    %c0_i32 = arith.constant 0 : i32
    %c0_i32_0 = arith.constant 0 : i32
    return %arg0, %c0_i32 : i32, i32
  }
  func.func @transform_18(%arg0: i32, %arg1: memref<1xi32, #tpu.memory_space<smem>>) -> (i32, i32) {
    %c0_i32 = arith.constant 0 : i32
    %c0_i32_0 = arith.constant 0 : i32
    return %arg0, %c0_i32 : i32, i32
  }
  func.func @transform_19(%arg0: i32, %arg1: memref<1xi32, #tpu.memory_space<smem>>) -> (i32, i32) {
    %c0_i32 = arith.constant 0 : i32
    %c0_i32_0 = arith.constant 0 : i32
    return %arg0, %c0_i32 : i32, i32
  }
}

</mosaic_0001>

<bundles_post_ra>
// kernel: lora_r_actor_forward.1
= control target key start
LH: loop header
LB: loop body
LE: loop exit
PB: predicated region body
PF: predicated region fallthrough
CT: control target
= control target key end

     0   :  { %s2315_s0 = inlined_call_operand.<no memory space> [shape: s32[1], index: 0, kind: input, shape index: {}]   ;;  %s2316_s1 = inlined_call_operand.vmem [shape: f32[8,128], index: 1, kind: input, shape index: {}]   ;;  %s2317_s2 = inlined_call_operand.vmem [shape: f32[8,128], index: 2, kind: input, shape index: {}]   ;;  %s2318_s3 = inlined_call_operand.vmem [shape: f32[8,1], index: 3, kind: input, shape index: {}]   ;;  %s2319_s4 = inlined_call_operand.vmem [shape: f32[8,8], index: 4, kind: input, shape index: {}]   ;;  %s2320_s5 = inlined_call_operand.vmem [shape: f32[2,128], index: 5, kind: input, shape index: {}]   ;;  %s2321_s6 = inlined_call_operand.vmem [shape: bf16[2,128,128], index: 6, kind: input, shape index: {}]   ;;  %s2322_s7 = inlined_call_operand.hbm [shape: f32[3,128], index: 7, kind: input, shape index: {}]   ;;  %s2323_s8 = inlined_call_operand.hbm [shape: bf16[2,128,128], index: 8, kind: input, shape index: {}]   ;;  %s2324_s9 = inlined_call_operand.hbm [shape: f32[3,128], index: 9, kind: input, shape index: {}]   ;;  %s2325_s10 = inlined_call_operand.hbm [shape: bf16[2,128,384], index: 10, kind: input, shape index: {}]   ;;  %s2326_s11 = inlined_call_operand.hbm [shape: bf16[2,128,384], index: 11, kind: input, shape index: {}]   ;;  %s2327_s12 = inlined_call_operand.hbm [shape: f32[2,384], index: 12, kind: input, shape index: {}]   ;;  %s2328_s13 = inlined_call_operand.hbm [shape: f32[2,128], index: 13, kind: input, shape index: {}]   ;;  %s2329_s14 = inlined_call_operand.hbm [shape: bf16[2,128,128], index: 14, kind: input, shape index: {}]   ;;  %s2330_s15 = inlined_call_operand.hbm [shape: f32[3,128], index: 15, kind: input, shape index: {}]   ;;  %s2331_s16 = inlined_call_operand.vmem [shape: bf16[2,128,8], index: 16, kind: input, shape index: {}]   ;;  %s2332_s17 = inlined_call_operand.hbm [shape: f32[1,8], index: 17, kind: input, shape index: {}]   ;;  %s2333_s18 = inlined_call_operand.vmem [shape: s32[8,1], index: 18, kind: output, shape index: {0}]   ;;  %s2334_s19 = inlined_call_operand.vmem [shape: f32[8,1], index: 19, kind: output, shape index: {1}]   ;;  %s2335_s20 = inlined_call_operand.hbm [shape: f32[8,128], index: 20, kind: output, shape index: {2}]  }
   0x1   :  { %2341 = sst [smem:[#allocation29_spill]] %s2315_s0 }
   0x2   :  { %2342 = sst [smem:[#allocation30_spill]] %s2316_s1 }
   0x3   :  { %2343 = sst [smem:[#allocation31_spill]] %s2317_s2 }
   0x4   :  { %2344 = sst [smem:[#allocation32_spill]] %s2318_s3 }
   0x5   :  { %2345 = sst [smem:[#allocation33_spill]] %s2319_s4 }
   0x6   :  { %2346 = sst [smem:[#allocation34_spill]] %s2333_s18 }
   0x7   :  { %2347 = sst [smem:[#allocation35_spill]] %s2334_s19 }
   0x8   :  { %27 = vsyncpa [#allocation5], 0 }
   0x9   :  { %28 = vsyncpa [#allocation8], 0 }
   0xa   :  { %29 = vsyncpa [#allocation11], 0 }
   0xb   :  { %30 = vsyncpa [#allocation14], 0 }
   0xc   :  { %31 = vsyncpa [#allocation17], 0 }
   0xd   :  { %32 = vsyncpa [#allocation20], 0  ;;  %s2348_s23 = sld [smem:[#allocation29_spill]] }
  0x13   :  { %s2337_s24 = sshll.u32 %s2348_s23, 6 }
  0x14   :  { %33 = vsyncpa [#allocation6], 0  ;;  %s71_s27 = scalar_lea.hbm %s2323_s8, %s2337_s24  ;;  %s2031_s28 = smov [#allocation7]  }
  0x15   :  { %s74_s4 = sshll.u32 %s2031_s28, 4  ;;  %s72_s29 = sshll.u32 %s71_s27, 4  ;;  %s75_s4 = int_to_ptr.vmem [resolvable:$true] %s74_s4  ;;  %s73_s29 = int_to_ptr.hbm [resolvable:$true] %s72_s29 }
  0x16   :  { %s2338_s21 = smul.u32 192, %s2348_s23  ;;  %s1753_s1 = sshra.s32 %s73_s29, 4  ;;  %s1754_s1 = int_to_ptr.hbm [resolvable:$true] %s1753_s1 }
  0x17   :  { %s1755_s22 = scalar_lea.hbm %s1754_s1, 64  ;;  %s1757_s25 = scalar_lea.hbm %s2323_s8, 128 }
  0x18   :  { %p1756_p0 = scmp.ne.s32.totalorder %s1754_s1, %s1755_s22  ;;  %p1758_p1 = scmp.lt.s32.totalorder %s1754_s1, %s2323_s8 }
  0x19   :  { %p1759_p2 = scmp.lt.s32.totalorder %s1757_s25, %s1755_s22 }
  0x1b   :  { %p1760_p3 = por %p1759_p2, %p1758_p1 }
  0x1d   :  { %p1761_p4 = pnand %p1760_p3, %p1756_p0 }
  0x1f   :  { %1764 = shalt.err (!%p1761_p4)
}
  0x20   :  { %s2032_s26 = smov 64   ;;  %s2033_s27 = smov 4  }
  0x21   :  { %80 = dma.hbm_to_vmem [thread:$0]  %s73_s29, 1024, %s75_s4, [#allocation8], %s2032_s26, %s2032_s26, %s2033_s27  }
  0x22   :  { %s99_s2 = scalar_lea.hbm %s2325_s10, %s2338_s21  ;;  %s2034_s8 = smov [#allocation10]  }
  0x23   :  { %s100_s18 = sshll.u32 %s99_s2, 4  ;;  %s102_s1 = sshll.u32 %s2034_s8, 4  ;;  %s101_s18 = int_to_ptr.hbm [resolvable:$true] %s100_s18  ;;  %s103_s1 = int_to_ptr.vmem [resolvable:$true] %s102_s1 }
  0x24   :  { %s1777_s22 = sshra.s32 %s101_s18, 4  ;;  %s1781_s4 = scalar_lea.hbm %s2325_s10, 384  ;;  %s1778_s22 = int_to_ptr.hbm [resolvable:$true] %s1777_s22 }
  0x25   :  { %s1779_s25 = scalar_lea.hbm %s1778_s22, 192  ;;  %p1782_p6 = scmp.lt.s32.totalorder %s1778_s22, %s2325_s10 }
  0x26   :  { %p1780_p5 = scmp.ne.s32.totalorder %s1778_s22, %s1779_s25  ;;  %p1783_p7 = scmp.lt.s32.totalorder %s1781_s4, %s1779_s25 }
  0x28   :  { %p1784_p8 = por %p1783_p7, %p1782_p6 }
  0x2a   :  { %p1785_p9 = pnand %p1784_p8, %p1780_p5 }
  0x2c   :  { %1788 = shalt.err (!%p1785_p9)
}
  0x2d   :  { %s2339_s30 = smov 192   ;;  %s2340_s19 = smov 12  }
  0x2e   :  { %108 = dma.hbm_to_vmem [thread:$0]  %s101_s18, 3072, %s103_s1, [#allocation11], %s2339_s30, %s2339_s30, %s2340_s19  }
  0x2f   :  { %s131_s8 = sshll.u32 %s2327_s12, 4  ;;  %s2037_s24 = smov [#allocation13]   ;;  %s132_s8 = int_to_ptr.hbm [resolvable:$true] %s131_s8 }
  0x30   :  { %s133_s3 = sshll.u32 %s2037_s24, 4  ;;  %s2349_s22 = sshll.u32 %s2348_s23, 6  ;;  %s134_s3 = int_to_ptr.vmem [resolvable:$true] %s133_s3 }
  0x31   :  { %s155_s28 = scalar_lea.hbm %s2329_s14, %s2349_s22  ;;  %s2038_s18 = smov [#allocation16]  }
  0x32   :  { %136 = dma.hbm_to_vmem [thread:$0]  %s132_s8, 96, %s134_s3, [#allocation14]  }
  0x33   :  { %s156_s21 = sshll.u32 %s155_s28, 4  ;;  %s158_s1 = sshll.u32 %s2038_s18, 4  ;;  %s157_s21 = int_to_ptr.hbm [resolvable:$true] %s156_s21  ;;  %s159_s1 = int_to_ptr.vmem [resolvable:$true] %s158_s1 }
  0x34   :  { %s58_s2 = sshll.u32 %s2322_s7, 4  ;;  %s1825_s24 = sshra.s32 %s157_s21, 4  ;;  %s1826_s24 = int_to_ptr.hbm [resolvable:$true] %s1825_s24  ;;  %s59_s2 = int_to_ptr.hbm [resolvable:$true] %s58_s2 }
  0x35   :  { %s1827_s30 = scalar_lea.hbm %s1826_s24, 64  ;;  %s1829_s19 = scalar_lea.hbm %s2329_s14, 128 }
  0x36   :  { %p1828_p10 = scmp.ne.s32.totalorder %s1826_s24, %s1827_s30  ;;  %p1830_p11 = scmp.lt.s32.totalorder %s1826_s24, %s2329_s14 }
  0x37   :  { %p1831_p12 = scmp.lt.s32.totalorder %s1829_s19, %s1827_s30 }
  0x39   :  { %p1832_p13 = por %p1831_p12, %p1830_p11 }
  0x3b   :  { %p1833_p0 = pnand %p1832_p13, %p1828_p10 }
  0x3d   :  { %1836 = shalt.err (!%p1833_p0)
}
  0x3e   :  { %164 = dma.hbm_to_vmem [thread:$0]  %s157_s21, 1024, %s159_s1, [#allocation17], %s2032_s26, %s2032_s26, %s2033_s27  }
  0x3f   :  { %s2039_s7 = smov [#allocation4]   ;;  %s86_s28 = sshll.u32 %s2324_s9, 4  ;;  %s87_s28 = int_to_ptr.hbm [resolvable:$true] %s86_s28 }
  0x40   :  { %s60_s8 = sshll.u32 %s2039_s7, 4  ;;  %s2350_s30 = smul.u32 192, %s2348_s23  ;;  %s61_s8 = int_to_ptr.vmem [resolvable:$true] %s60_s8 }
  0x41   :  { %63 = dma.hbm_to_vmem [thread:$0]  %s59_s2, 64, %s61_s8, [#allocation5]  }
  0x42   :  { %s116_s12 = scalar_lea.hbm %s2326_s11, %s2350_s30  ;;  %s2040_s24 = smov [#allocation9]  }
  0x43   :  { %s88_s21 = sshll.u32 %s2040_s24, 4  ;;  %s117_s26 = sshll.u32 %s116_s12, 4  ;;  %s89_s21 = int_to_ptr.vmem [resolvable:$true] %s88_s21  ;;  %s118_s26 = int_to_ptr.hbm [resolvable:$true] %s117_s26 }
  0x44   :  { %91 = dma.hbm_to_vmem [thread:$0]  %s87_s28, 64, %s89_s21, [#allocation8]  }
  0x45   :  { %s142_s9 = sshll.u32 %s2328_s13, 4  ;;  %s2041_s29 = smov [#allocation12]   ;;  %s143_s9 = int_to_ptr.hbm [resolvable:$true] %s142_s9 }
  0x46   :  { %s119_s2 = sshll.u32 %s2041_s29, 4  ;;  %s1897_s10 = sshra.s32 %s118_s26, 4  ;;  %s120_s2 = int_to_ptr.vmem [resolvable:$true] %s119_s2  ;;  %s1898_s10 = int_to_ptr.hbm [resolvable:$true] %s1897_s10 }
  0x47   :  { %s1899_s25 = scalar_lea.hbm %s1898_s10, 192  ;;  %s1901_s8 = scalar_lea.hbm %s2326_s11, 384 }
  0x48   :  { %p1900_p1 = scmp.ne.s32.totalorder %s1898_s10, %s1899_s25  ;;  %p1902_p2 = scmp.lt.s32.totalorder %s1898_s10, %s2326_s11 }
  0x49   :  { %p1903_p3 = scmp.lt.s32.totalorder %s1901_s8, %s1899_s25 }
  0x4b   :  { %p1904_p4 = por %p1903_p3, %p1902_p2 }
  0x4d   :  { %p1905_p5 = pnand %p1904_p4, %p1900_p1 }
  0x4f   :  { %1908 = shalt.err (!%p1905_p5)
}
  0x50   :  { %s2351_s13 = smov 12   ;;  %s2352_s28 = smov 192  }
  0x51   :  { %125 = dma.hbm_to_vmem [thread:$0]  %s118_s26, 3072, %s120_s2, [#allocation11], %s2352_s28, %s2352_s28, %s2351_s13  }
  0x52   :  { %s2042_s18 = smov [#allocation15]   ;;  %s170_s0 = sshll.u32 %s2330_s15, 4  ;;  %s171_s0 = int_to_ptr.hbm [resolvable:$true] %s170_s0 }
  0x53   :  { %s144_s14 = sshll.u32 %s2042_s18, 4  ;;  %s190_s11 = sshll.u32 %s2332_s17, 4  ;;  %s145_s14 = int_to_ptr.vmem [resolvable:$true] %s144_s14  ;;  %s191_s11 = int_to_ptr.hbm [resolvable:$true] %s190_s11 }
  0x54   :  { %147 = dma.hbm_to_vmem [thread:$0]  %s143_s9, 32, %s145_s14, [#allocation14]  }
  0x55   :  { %s2043_s21 = smov [#allocation18]   ;;  %s2044_s1 = smov [#allocation19]  }
  0x56   :  { %s172_s27 = sshll.u32 %s2043_s21, 4  ;;  %s192_s26 = sshll.u32 %s2044_s1, 4  ;;  %s173_s27 = int_to_ptr.vmem [resolvable:$true] %s172_s27  ;;  %s193_s26 = int_to_ptr.vmem [resolvable:$true] %s192_s26 }
  0x57   :  { %175 = dma.hbm_to_vmem [thread:$0]  %s171_s0, 64, %s173_s27, [#allocation17]  }
  0x58   :  { %195 = dma.hbm_to_vmem [thread:$0]  %s191_s11, 16, %s193_s26, [#allocation20]  }
  0x59   :  { %2017 = dma.done.wait [#allocation5], 64  }
  0x5a   :  { %2018 = vsyncadd [#allocation5], 4294967232 }
  0x5b   :  { %2019 = dma.done.wait [#allocation8], 1088  }
  0x5c   :  { %2020 = vsyncadd [#allocation8], 4294966208 }
  0x5d   :  { %2021 = dma.done.wait [#allocation11], 6144  }
  0x5e   :  { %2022 = vsyncadd [#allocation11], 4294961152 }
  0x5f   :  { %2023 = dma.done.wait [#allocation14], 128  }
  0x60   :  { %2024 = vsyncadd [#allocation14], 4294967168 }
  0x61   :  { %2025 = dma.done.wait [#allocation17], 1088  }
  0x62   :  { %2026 = vsyncadd [#allocation17], 4294966208 }
  0x63   :  { %2027 = dma.done.wait [#allocation20], 16  }
  0x64   :  { %2028 = vsyncadd [#allocation20], 4294967280  ;;  %s2353_s9 = sld [smem:[#allocation30_spill]]  ;;  %p249_p6 = scmp.lt.s32.totalorder %s2348_s23, 1  ;;  %v2045_v1 = vmov 128.0   ;;  %v1642_v43 = vld [vmem:[#allocation7 + $0x38] sm:$0xff] }
  0x65   :  { %1727 = vrcp.f32 %v2045_v1  ;;  %v266_v28 = vld [vmem:[%s2320_s5] sm:$0x3]  ;;  %471 = vmatpush.bf16.msra.mxu1 %v1642_v43  ;;  %v1641_v48 = vld [vmem:[#allocation7 + $0x30] sm:$0xff]  ;;  %v1640_v49 = vld [vmem:[#allocation7 + $0x28] sm:$0xff]  ;;  %s2354_s28 = sld [smem:[#allocation32_spill]]  ;;  %s2047_s11 = smov [#allocation21]  }
  0x66   :  { %s2360_s23 = smov (!%p249_p6, %s2348_s23), 1  ;;  %v295_v30 = vperm.slane %v266_v28, 0  ;;  %v297_v33 = vperm.slane %v266_v28, 1  ;;  %v299_v37 = vld [vmem:[#allocation4] sm:$0x7]  ;;  %v1639_v50 = vld [vmem:[#allocation7 + $0x20] sm:$0xff] }
  0x67   :  { %s1625_s22 = sshll.u32 %s2360_s23, 6  ;;  %v317_v38 = vperm.slane %v299_v37, 0  ;;  %v1638_v51 = vld [vmem:[#allocation7 + $0x18] sm:$0xff]  ;;  %v1637_v52 = vld [vmem:[#allocation7 + $0x10] sm:$0xff]  ;;  %v1636_v53 = vld [vmem:[#allocation7 + $0x8] sm:$0xff]  ;;  %s2355_s30 = sld [smem:[#allocation31_spill]] }
  0x68   :  { %s253_s3 = scalar_lea.vmem %s2321_s6, %s1625_s22  ;;  %v1635_v54 = vld [vmem:[#allocation7] sm:$0xff]  ;;  %v1427_v28 = vld [vmem:[#allocation10 + $0x78] sm:$0xf]  ;;  %s264_s12 = scalar_lea.vmem %s2331_s16, %s1625_s22 }
  0x69   :  { %v1634_v2 = vld [vmem:[%s253_s3 + $0x38] sm:$0xff]  ;;  %v1633_v13 = vld [vmem:[%s253_s3 + $0x30] sm:$0xff]  ;;  %v1632_v14 = vld [vmem:[%s253_s3 + $0x28] sm:$0xff]  ;;  %472 = vmatpush.bf16.msra.mxu1 %v1641_v48  ;;  %s2356_s24 = sld [smem:[#allocation33_spill]]  ;;  %s1250_s21 = sshll.u32 %s2047_s11, 4  ;;  %s1251_s21 = int_to_ptr.vmem [resolvable:$true] %s1250_s21 }
  0x6a   :  { %v267_v0 = vld [vmem:[%s2353_s9] sm:$0xff]  ;;  %366 = vmatpush.bf16.msra.mxu0 %v1634_v2  ;;  %v1630_v16 = vld [vmem:[%s253_s3 + $0x18] sm:$0xff]  ;;  %v1629_v17 = vld [vmem:[%s253_s3 + $0x10] sm:$0xff]  ;;  %s1252_s26 = sshll.u32 %s2335_s20, 4  ;;  %s2357_s9 = sld [smem:[#allocation34_spill]]  ;;  %s1253_s26 = int_to_ptr.hbm [resolvable:$true] %s1252_s26 }
  0x6b   :  { %268 = vadd.xlane.f32.xlu0 %v267_v0  ;;  %v1728_v3 = vpop.eup %1727  ;;  %v1631_v15 = vld [vmem:[%s253_s3 + $0x20] sm:$0xff]  ;;  %v1628_v18 = vld [vmem:[%s253_s3 + $0x8] sm:$0xff]  ;;  %v1653_v48 = vld [vmem:[#allocation10 + $0x50] sm:$0xf0]  ;;  %s2358_s2 = sld [smem:[#allocation35_spill]] }
  0x6c   :  { %v271_v4 = vmul.f32 128.0, %v1728_v3  ;;  %vm275_vm0 = vweird.f32 %v1728_v3  ;;  %v1627_v19 = vld [vmem:[%s253_s3] sm:$0xff] }
  0x6d   :  { %473 = vmatpush.bf16.msra.mxu1 %v1640_v49  ;;  %v1652_v49 = vld [vmem:[#allocation10 + $0x4c] sm:$0xf] }
  0x6e   :  { %v272_v5 = vsub.f32 1.0, %v271_v4  ;;  %367 = vmatpush.bf16.msra.mxu0 %v1633_v13 }
  0x70   :  { %v273_v6 = vmul.f32 %v1728_v3, %v272_v5 }
  0x71   :  { %474 = vmatpush.bf16.msra.mxu1 %v1639_v50 }
  0x72   :  { %v274_v7 = vadd.f32 %v1728_v3, %v273_v6  ;;  %368 = vmatpush.bf16.msra.mxu0 %v1632_v14  ;;  %v510_v14 = vld [vmem:[%s2354_s28] sm:$0xff] }
  0x74   :  { %v2258_v8 = vsel %vm275_vm0, %v1728_v3, %v274_v7  ;;  %v402_v3 = vperm.slane %v299_v37, 2  ;;  %v2267_v7 = vld [vmem:[#allocation9] sm:$0x7] }
  0x75   :  { %475 = vmatpush.bf16.msra.mxu1 %v1638_v51  ;;  %v1405_v51 = vld [vmem:[#allocation10 + $0x54] sm:$0xf0] }
  0x76   :  { %369 = vmatpush.bf16.msra.mxu0 %v1631_v15  ;;  %v1451_v15 = vld [vmem:[#allocation10 + $0xa8] sm:$0xf] }
  0x79   :  { %476 = vmatpush.bf16.msra.mxu1 %v1637_v52  ;;  %v1447_v52 = vld [vmem:[#allocation10 + $0x98] sm:$0xf] }
  0x7a   :  { %370 = vmatpush.bf16.msra.mxu0 %v1630_v16  ;;  %v1665_v16 = vld [vmem:[#allocation10 + $0xb0] sm:$0xf0] }
  0x7d   :  { %477 = vmatpush.bf16.msra.mxu1 %v1636_v53  ;;  %v1663_v53 = vld [vmem:[#allocation10 + $0xa0] sm:$0xf0] }
  0x7e   :  { %371 = vmatpush.bf16.msra.mxu0 %v1629_v17  ;;  %v2046_v17 = vmov 0  }
  0x7f   :  { %1725 = vset.pattern.permute.xlu0 %v2046_v17 }
  0x81   :  { %478 = vmatpush.bf16.msra.mxu1 %v1635_v54  ;;  %v1408_v54 = vor.u32 %v1652_v49, %v1405_v51  ;;  %v1499_v49 = vld [vmem:[#allocation12 + $0x48] sm:$0xf] }
  0x82   :  { %372 = vmatpush.bf16.msra.mxu0 %v1628_v18  ;;  %v1452_v18 = vor.u32 %v1665_v16, %v1451_v15  ;;  %v1657_v15 = vld [vmem:[#allocation10 + $0x70] sm:$0xf0] }
  0x84   :  { %689 = vmatpush.bf16.msra.mxu2 %v1452_v18  ;;  %v1523_v18 = vld [vmem:[#allocation12 + $0x78] sm:$0xf] }
  0x86   :  { %373 = vmatpush.bf16.msra.mxu0 %v1627_v19  ;;  %v1664_v19 = vld [vmem:[#allocation10 + $0xac] sm:$0xf] }
  0xde   :  { %v269_v9 = vpop.xlane.xlu0 %268 }
  0xdf   :  { %v277_v10 = vmul.f32 %v2258_v8, %v269_v9  ;;  %v422_v9 = vperm.slane %v2267_v7, 0 }
  0xe1   :  { %v278_v11 = vsub.f32 %v267_v0, %v277_v10  ;;  %v400_v0 = vperm.slane %v299_v37, 1  ;;  %v1415_v37 = vld [vmem:[#allocation10 + $0x60] sm:$0xf] }
  0xe3   :  { %v279_v12 = vmul.f32 %v278_v11, %v278_v11 }
  0xe5   :  { %280 = vadd.xlane.f32.xlu0 %v279_v12 }
  0xf9   :  { %513 = vperm.xlu0 %1725, %v510_v14   ;;  %v1423_v14 = vld [vmem:[#allocation10 + $0x68] sm:$0xf] }
  0xfa   :  { %v1424_v17 = vor.u32 %v1657_v15, %v1423_v14 }
 0x158   :  { %v281_v20 = vpop.xlane.xlu0 %280 }
 0x159   :  { %v282_v21 = vmul.f32 %v281_v20, %v2258_v8  ;;  %v1453_v20 = vld [vmem:[#allocation10 + $0xb4] sm:$0xf0] }
 0x15b   :  { %v283_v22 = vadd.f32 1e-05, %v282_v21  ;;  %v1439_v21 = vld [vmem:[#allocation10 + $0x90] sm:$0xf] }
 0x15d   :  { %1729 = vrsqrt.f32 %v283_v22  ;;  %vm290_vm2 = vweird.f32 %v283_v22 }
 0x163   :  { %v1730_v23 = vpop.eup %1729 }
 0x164   :  { %v285_v24 = vmul.f32 %v1730_v23, %v283_v22  ;;  %vm291_vm1 = vweird.f32 %v1730_v23  ;;  %v1456_v22 = vor.u32 %v1664_v19, %v1453_v20  ;;  %v1683_v19 = vld [vmem:[#allocation12 + $0x80] sm:$0xf0] }
 0x165   :  { %vm292_vm3 = vmor %vm290_vm2, %vm291_vm1  ;;  %v1524_v20 = vor.u32 %v1683_v19, %v1523_v18  ;;  %v1501_v18 = vld [vmem:[#allocation12 + $0x54] sm:$0xf0]  ;;  %v1507_v19 = vld [vmem:[#allocation12 + $0x50] sm:$0xf] }
 0x166   :  { %v286_v25 = vmul.f32 %v1730_v23, %v285_v24  ;;  %v1661_v24 = vld [vmem:[#allocation10 + $0x94] sm:$0xf]  ;;  %702 = vmatpush.bf16.msra.mxu3 %v1456_v22  ;;  %v1644_v22 = vld [vmem:[#allocation10 + $0x8] sm:$0xf0] }
 0x168   :  { %v287_v26 = vmul.f32 0.5, %v286_v25  ;;  %v1441_v25 = vld [vmem:[#allocation10 + $0x9c] sm:$0xf0] }
 0x16a   :  { %v288_v27 = vsub.f32 1.5, %v287_v26 }
 0x16b   :  { %v514_v14 = vpop.permute.xlu0 %513 }
 0x16c   :  { %v289_v29 = vmul.f32 %v1730_v23, %v288_v27  ;;  %v1444_v27 = vor.u32 %v1661_v24, %v1441_v25  ;;  %v1369_v25 = vld [vmem:[#allocation10 + $0xc] sm:$0xf0] }
 0x16e   :  { %v293_v31 = vsel %vm292_vm3, %v1730_v23, %v289_v29  ;;  %v1662_v23 = vld [vmem:[#allocation10 + $0x98] sm:$0xf0]  ;;  %v1659_v29 = vld [vmem:[#allocation10 + $0x80] sm:$0xf0]  ;;  %703 = vmatpush.bf16.msra.mxu3 %v1444_v27 }
 0x16f   :  { %v294_v32 = vmul.f32 %v293_v31, %v278_v11  ;;  %v1440_v26 = vor.u32 %v1662_v23, %v1439_v21  ;;  %v1429_v31 = vld [vmem:[#allocation10 + $0x84] sm:$0xf0]  ;;  %v1367_v21 = vld [vmem:[#allocation10] sm:$0xf]  ;;  %v1643_v23 = vld [vmem:[#allocation10 + $0x4] sm:$0xf] }
 0x170   :  { %v1368_v24 = vor.u32 %v1644_v22, %v1367_v21  ;;  %v1654_v27 = vld [vmem:[#allocation10 + $0x58] sm:$0xf0]  ;;  %v1463_v22 = vld [vmem:[#allocation12] sm:$0xf] }
 0x171   :  { %v296_v34 = vmul.f32 %v295_v30, %v294_v32  ;;  %v1658_v30 = vld [vmem:[#allocation10 + $0x7c] sm:$0xf]  ;;  %v1459_v32 = vld [vmem:[#allocation10 + $0xb0] sm:$0xf]  ;;  %690 = vmatpush.bf16.msra.mxu2 %v1440_v26 }
 0x172   :  { %v1411_v26 = vld [vmem:[#allocation10 + $0x50] sm:$0xf]  ;;  %v1678_v21 = vld [vmem:[#allocation12 + $0x58] sm:$0xf0] }
 0x173   :  { %v298_v35 = vadd.f32 %v297_v33, %v296_v34  ;;  %v1666_v33 = vld [vmem:[#allocation10 + $0xb8] sm:$0xf0]  ;;  %v1428_v34 = vor.u32 %v1659_v29, %v1427_v28  ;;  %v1372_v28 = vor.u32 %v1643_v23, %v1369_v25  ;;  %v1412_v29 = vor.u32 %v1654_v27, %v1411_v26  ;;  %v1668_v23 = vld [vmem:[#allocation12 + $0x8] sm:$0xf0]  ;;  %v1673_v27 = vld [vmem:[#allocation12 + $0x34] sm:$0xf] }
 0x174   :  { %v1508_v25 = vor.u32 %v1678_v21, %v1507_v19  ;;  %v1464_v26 = vor.u32 %v1668_v23, %v1463_v22 }
 0x175   :  { %v300_v36 = vpack.c.bf16 %v298_v35, %v298_v35  ;;  %v1460_v35 = vor.u32 %v1666_v33, %v1459_v32  ;;  %691 = vmatpush.bf16.msra.mxu2 %v1428_v34  ;;  %v1555_v32 = vld [vmem:[#allocation12 + $0xb0] sm:$0xf]  ;;  %v1690_v34 = vld [vmem:[#allocation12 + $0xb8] sm:$0xf0] }
 0x177   :  { %374 = vmatmul.bf16.vlgmr.msra.gmra.mxu0 %v300_v36  ;;  %v1432_v36 = vor.u32 %v1658_v30, %v1429_v31  ;;  %v1688_v30 = vld [vmem:[#allocation12 + $0xac] sm:$0xf]  ;;  %v1549_v31 = vld [vmem:[#allocation12 + $0xb4] sm:$0xf0] }
 0x178   :  { %715 = vmatpush.bf16.msrb.mxu0 %v1460_v35  ;;  %v1552_v33 = vor.u32 %v1688_v30, %v1549_v31  ;;  %v1511_v35 = vld [vmem:[#allocation12 + $0x60] sm:$0xf] }
 0x179   :  { %704 = vmatpush.bf16.msra.mxu3 %v1432_v36  ;;  %v1680_v36 = vld [vmem:[#allocation12 + $0x68] sm:$0xf0] }
 0x1f4   :  { %v375_v39 = vpop.f32.mrf.mxu0 }
 0x1f5   :  { %v376_v40 = vadd.f32 %v375_v39, %v317_v38  ;;  %v1656_v38 = vld [vmem:[#allocation10 + $0x68] sm:$0xf0]  ;;  %v1655_v39 = vld [vmem:[#allocation10 + $0x64] sm:$0xf] }
 0x1f7   :  { %v379_v41 = vmax.f32 %v376_v40, 0.0  ;;  %v1417_v40 = vld [vmem:[#allocation10 + $0x6c] sm:$0xf0] }
 0x1f9   :  { %380 = vadd.xlane.f32.xlu1 %v379_v41 }
 0x1fc   :  { %v377_v42 = vpop.f32.mrf.mxu0 }
 0x1fd   :  { %v1420_v42 = vor.u32 %v1655_v39, %v1417_v40  ;;  %v1399_v39 = vld [vmem:[#allocation10 + $0x38] sm:$0xf]  ;;  %v1651_v40 = vld [vmem:[#allocation10 + $0x40] sm:$0xf0] }
 0x1ff   :  { %705 = vmatpush.bf16.msra.mxu3 %v1420_v42  ;;  %v1400_v42 = vor.u32 %v1651_v40, %v1399_v39  ;;  %v1672_v39 = vld [vmem:[#allocation12 + $0x28] sm:$0xf0] }
 0x203   :  { %706 = vmatpush.bf16.msra.mxu3 %v1408_v54  ;;  %v1682_v54 = vld [vmem:[#allocation12 + $0x7c] sm:$0xf] }
 0x26c   :  { %v381_v44 = vpop.xlane.xlu1 %380 }
 0x26d   :  { %v382_v45 = vmul.f32 %v381_v44, %v2258_v8 }
 0x26f   :  { %v383_v46 = vsub.f32 %v379_v41, %v382_v45  ;;  %v1416_v41 = vor.u32 %v1656_v38, %v1415_v37  ;;  %v1556_v37 = vor.u32 %v1690_v34, %v1555_v32  ;;  %v1512_v38 = vor.u32 %v1680_v36, %v1511_v35  ;;  %v1670_v35 = vld [vmem:[#allocation12 + $0x1c] sm:$0xf]  ;;  %v1477_v36 = vld [vmem:[#allocation12 + $0x24] sm:$0xf0] }
 0x270   :  { %v1480_v40 = vor.u32 %v1670_v35, %v1477_v36 }
 0x271   :  { %v384_v47 = vmul.f32 %v383_v46, %v383_v46  ;;  %692 = vmatpush.bf16.msra.mxu2 %v1416_v41  ;;  %v1685_v41 = vld [vmem:[#allocation12 + $0x94] sm:$0xf] }
 0x273   :  { %385 = vadd.xlane.f32.xlu1 %v384_v47  ;;  %v1403_v47 = vld [vmem:[#allocation10 + $0x48] sm:$0xf] }
 0x274   :  { %v1404_v50 = vor.u32 %v1653_v48, %v1403_v47 }
 0x276   :  { %693 = vmatpush.bf16.msra.mxu2 %v1404_v50  ;;  %v1677_v50 = vld [vmem:[#allocation12 + $0x50] sm:$0xf0] }
 0x277   :  { %v1500_v51 = vor.u32 %v1677_v50, %v1499_v49 }
 0x2e6   :  { %v386_v55 = vpop.xlane.xlu1 %385 }
 0x2e7   :  { %v387_v56 = vmul.f32 %v386_v55, %v2258_v8  ;;  %v1448_v55 = vor.u32 %v1663_v53, %v1447_v52  ;;  %v1387_v52 = vld [vmem:[#allocation10 + $0x20] sm:$0xf]  ;;  %v1648_v53 = vld [vmem:[#allocation10 + $0x28] sm:$0xf0] }
 0x2e9   :  { %v388_v57 = vadd.f32 1e-05, %v387_v56  ;;  %v1547_v56 = vld [vmem:[#allocation12 + $0xa8] sm:$0xf]  ;;  %716 = vmatpush.bf16.msrb.mxu0 %v1448_v55  ;;  %v1388_v55 = vor.u32 %v1648_v53, %v1387_v52 }
 0x2eb   :  { %1731 = vrsqrt.f32 %v388_v57  ;;  %vm395_vm5 = vweird.f32 %v388_v57 }
 0x2f1   :  { %v1732_v58 = vpop.eup %1731 }
 0x2f2   :  { %v390_v59 = vmul.f32 %v1732_v58, %v388_v57  ;;  %vm396_vm4 = vweird.f32 %v1732_v58  ;;  %v1689_v57 = vld [vmem:[#allocation12 + $0xb0] sm:$0xf0] }
 0x2f3   :  { %vm397_vm6 = vmor %vm395_vm5, %vm396_vm4 }
 0x2f4   :  { %v391_v60 = vmul.f32 %v1732_v58, %v390_v59  ;;  %v1391_v59 = vld [vmem:[#allocation10 + $0x30] sm:$0xf] }
 0x2f6   :  { %v392_v61 = vmul.f32 0.5, %v391_v60  ;;  %v1650_v60 = vld [vmem:[#allocation10 + $0x38] sm:$0xf0] }
 0x2f8   :  { %v393_v62 = vsub.f32 1.5, %v392_v61  ;;  %v1649_v61 = vld [vmem:[#allocation10 + $0x34] sm:$0xf] }
 0x2fa   :  { %v394_v63 = vmul.f32 %v1732_v58, %v393_v62  ;;  %v1392_v62 = vor.u32 %v1650_v60, %v1391_v59 }
 0x2fc   :  { %v398_v1 = vsel %vm397_vm6, %v1732_v58, %v394_v63  ;;  %v1548_v58 = vor.u32 %v1689_v57, %v1547_v56  ;;  %v1393_v63 = vld [vmem:[#allocation10 + $0x3c] sm:$0xf0]  ;;  %694 = vmatpush.bf16.msra.mxu2 %v1392_v62  ;;  %v1525_v56 = vld [vmem:[#allocation12 + $0x84] sm:$0xf0]  ;;  %v1674_v62 = vld [vmem:[#allocation12 + $0x38] sm:$0xf0] }
 0x2fd   :  { %v399_v2 = vmul.f32 %v398_v1, %v383_v46  ;;  %v1660_v1 = vld [vmem:[#allocation10 + $0x88] sm:$0xf0]  ;;  %v1531_v57 = vld [vmem:[#allocation12 + $0x80] sm:$0xf]  ;;  %v1528_v59 = vor.u32 %v1682_v54, %v1525_v56 }
 0x2fe   :  { %898 = vmatpush.bf16.msrb.mxu1 %v1548_v58  ;;  %v1684_v58 = vld [vmem:[#allocation12 + $0x88] sm:$0xf0] }
 0x2ff   :  { %v401_v4 = vmul.f32 %v400_v0, %v399_v2  ;;  %v1435_v0 = vld [vmem:[#allocation10 + $0x80] sm:$0xf]  ;;  %v1396_v2 = vor.u32 %v1649_v61, %v1393_v63  ;;  %v1532_v60 = vor.u32 %v1684_v58, %v1531_v57  ;;  %v1487_v61 = vld [vmem:[#allocation12 + $0x30] sm:$0xf]  ;;  %v1375_v63 = vld [vmem:[#allocation10 + $0x8] sm:$0xf] }
 0x300   :  { %v507_v58 = vperm.slane %v2267_v7, 2 }
 0x301   :  { %v403_v5 = vadd.f32 %v402_v3, %v401_v4  ;;  %v1436_v3 = vor.u32 %v1660_v1, %v1435_v0  ;;  %v1535_v4 = vld [vmem:[#allocation12 + $0x90] sm:$0xf]  ;;  %707 = vmatpush.bf16.msra.mxu3 %v1396_v2  ;;  %v1488_v0 = vor.u32 %v1674_v62, %v1487_v61  ;;  %v1645_v1 = vld [vmem:[#allocation10 + $0x10] sm:$0xf0]  ;;  %v1679_v2 = vld [vmem:[#allocation12 + $0x64] sm:$0xf] }
 0x303   :  { %v405_v6 = vpack.c.bf16 %v403_v5, %v403_v5  ;;  %v1686_v5 = vld [vmem:[#allocation12 + $0x98] sm:$0xf0]  ;;  %717 = vmatpush.bf16.msrb.mxu0 %v1436_v3  ;;  %v1513_v3 = vld [vmem:[#allocation12 + $0x6c] sm:$0xf0] }
 0x305   :  { %479 = vmatmul.bf16.vlgmr.msra.gmra.mxu1 %v405_v6  ;;  %v1536_v6 = vor.u32 %v1686_v5, %v1535_v4  ;;  %v1376_v4 = vor.u32 %v1645_v1, %v1375_v63  ;;  %v1516_v5 = vor.u32 %v1679_v2, %v1513_v3 }
 0x307   :  { %899 = vmatpush.bf16.msrb.mxu1 %v1536_v6  ;;  %718 = vmatpush.bf16.msrb.mxu0 %v1424_v17  ;;  %v1519_v6 = vld [vmem:[#allocation12 + $0x68] sm:$0xf]  ;;  %v1676_v17 = vld [vmem:[#allocation12 + $0x4c] sm:$0xf] }
 0x30b   :  { %900 = vmatpush.bf16.msrb.mxu1 %v1524_v20  ;;  %719 = vmatpush.bf16.msrb.mxu0 %v1412_v29  ;;  %v1504_v20 = vor.u32 %v1676_v17, %v1501_v18  ;;  %v1495_v29 = vld [vmem:[#allocation12 + $0x38] sm:$0xf] }
 0x30f   :  { %901 = vmatpush.bf16.msrb.mxu1 %v1512_v38  ;;  %720 = vmatpush.bf16.msrb.mxu0 %v1400_v42  ;;  %v1483_v38 = vld [vmem:[#allocation12 + $0x20] sm:$0xf]  ;;  %v1667_v42 = vld [vmem:[#allocation12 + $0x4] sm:$0xf] }
 0x313   :  { %902 = vmatpush.bf16.msrb.mxu1 %v1500_v51  ;;  %721 = vmatpush.bf16.msrb.mxu0 %v1388_v55  ;;  %v505_v55 = vperm.slane %v2267_v7, 1 }
 0x317   :  { %903 = vmatpush.bf16.msrb.mxu1 %v1488_v0  ;;  %722 = vmatpush.bf16.msrb.mxu0 %v1376_v4  ;;  %v517_v0 = vld [vmem:[#allocation13] sm:$0x3f] }
 0x318   :  { %v761_v1 = vperm.slane %v517_v0, 1  ;;  %v552_v2 = vperm.slane %v517_v0, 0  ;;  %v762_v17 = vperm.slane %v517_v0, 3 }
 0x31a   :  { %v767_v4 = vperm.slane %v761_v1, 1 }
 0x382   :  { %v480_v10 = vpop.f32.mrf.mxu1 }
 0x383   :  { %v481_v11 = vadd.f32 %v480_v10, %v422_v9  ;;  %v1379_v9 = vld [vmem:[#allocation10 + $0x18] sm:$0xf]  ;;  %v1647_v10 = vld [vmem:[#allocation10 + $0x20] sm:$0xf0] }
 0x385   :  { %v484_v12 = vmax.f32 %v481_v11, 0.0  ;;  %v1646_v11 = vld [vmem:[#allocation10 + $0x1c] sm:$0xf] }
 0x387   :  { %485 = vadd.xlane.f32.xlu2 %v484_v12 }
 0x38a   :  { %v482_v13 = vpop.f32.mrf.mxu1 }
 0x38b   :  { %v1381_v13 = vld [vmem:[#allocation10 + $0x24] sm:$0xf0] }
 0x38c   :  { %v1384_v16 = vor.u32 %v1646_v11, %v1381_v13  ;;  %v509_v13 = vld [vmem:[%s2355_s30] sm:$0xff] }
 0x38e   :  { %708 = vmatpush.bf16.msra.mxu3 %v1384_v16  ;;  %v2281_v16 = vmul.f32 %v514_v14, %v509_v13 }
 0x390   :  { %v728_v31 = vpack.c.bf16 %v2281_v16, %v2281_v16 }
 0x392   :  { %709 = vmatpush.bf16.msra.mxu3 %v1372_v28  ;;  %v1489_v28 = vld [vmem:[#allocation12 + $0x3c] sm:$0xf0] }
 0x393   :  { %v1492_v32 = vor.u32 %v1673_v27, %v1489_v28 }
 0x396   :  { %924 = vmatpush.bf16.msrb.mxu3 %v1556_v37 }
 0x3fa   :  { %v486_v43 = vpop.xlane.xlu2 %485 }
 0x3fb   :  { %v487_v44 = vmul.f32 %v486_v43, %v2258_v8  ;;  %v1537_v43 = vld [vmem:[#allocation12 + $0x9c] sm:$0xf0] }
 0x3fc   :  { %v1540_v47 = vor.u32 %v1685_v41, %v1537_v43  ;;  %v1484_v41 = vor.u32 %v1672_v39, %v1483_v38  ;;  %v1465_v43 = vld [vmem:[#allocation12 + $0xc] sm:$0xf0]  ;;  %v554_v39 = vperm.slane %v517_v0, 4 }
 0x3fd   :  { %v2274_v45 = vsub.f32 %v484_v12, %v487_v44  ;;  %v1380_v12 = vor.u32 %v1647_v10, %v1379_v9  ;;  %v1543_v44 = vld [vmem:[#allocation12 + $0x98] sm:$0xf]  ;;  %v1681_v9 = vld [vmem:[#allocation12 + $0x70] sm:$0xf0] }
 0x3fe   :  { %v1475_v10 = vld [vmem:[#allocation12 + $0x18] sm:$0xf]  ;;  %v1520_v11 = vor.u32 %v1681_v9, %v1519_v6 }
 0x3ff   :  { %v489_v46 = vmul.f32 %v2274_v45, %v2274_v45  ;;  %695 = vmatpush.bf16.msra.mxu2 %v1380_v12  ;;  %v1671_v12 = vld [vmem:[#allocation12 + $0x20] sm:$0xf0] }
 0x400   :  { %v1476_v15 = vor.u32 %v1671_v12, %v1475_v10 }
 0x401   :  { %490 = vadd.xlane.f32.xlu2 %v489_v46  ;;  %v1687_v46 = vld [vmem:[#allocation12 + $0xa0] sm:$0xf0] }
 0x402   :  { %v1544_v48 = vor.u32 %v1687_v46, %v1543_v44  ;;  %904 = vmatpush.bf16.msrb.mxu1 %v1476_v15  ;;  %v1471_v44 = vld [vmem:[#allocation12 + $0x8] sm:$0xf]  ;;  %v1669_v46 = vld [vmem:[#allocation12 + $0x10] sm:$0xf0]  ;;  %v553_v15 = vperm.slane %v517_v0, 2 }
 0x403   :  { %696 = vmatpush.bf16.msra.mxu2 %v1368_v24 }
 0x404   :  { %925 = vmatpush.bf16.msrb.mxu3 %v1544_v48  ;;  %v1472_v48 = vor.u32 %v1669_v46, %v1471_v44  ;;  %v559_v19 = vperm.slane %v553_v15, 0  ;;  %v560_v46 = vperm.slane %v554_v39, 0 }
 0x406   :  { %905 = vmatpush.bf16.msrb.mxu1 %v1464_v26 }
 0x407   :  { %911 = vmatpush.bf16.msrb.mxu2 %v1552_v33  ;;  %v1675_v33 = vld [vmem:[#allocation12 + $0x40] sm:$0xf0] }
 0x408   :  { %926 = vmatpush.bf16.msrb.mxu3 %v1532_v60  ;;  %v1496_v34 = vor.u32 %v1675_v33, %v1495_v29  ;;  %v763_v33 = vperm.slane %v517_v0, 5 }
 0x409   :  { %906 = vmatmul.bf16.vlgmr.msrb.gmra.mxu1 %v728_v31 }
 0x40b   :  { %912 = vmatpush.bf16.msrb.mxu2 %v1540_v47  ;;  %v1468_v47 = vor.u32 %v1667_v42, %v1465_v43 }
 0x40c   :  { %927 = vmatpush.bf16.msrb.mxu3 %v1520_v11 }
 0x40f   :  { %913 = vmatpush.bf16.msrb.mxu2 %v1528_v59 }
 0x410   :  { %928 = vmatpush.bf16.msrb.mxu3 %v1508_v25 }
 0x413   :  { %914 = vmatpush.bf16.msrb.mxu2 %v1516_v5  ;;  %v558_v5 = vperm.slane %v552_v2, 0  ;;  %v1698_v2 = vld [vmem:[#allocation16 + $0x38] sm:$0xff] }
 0x414   :  { %929 = vmatpush.bf16.msrb.mxu3 %v1496_v34  ;;  %1077 = vmatpush.bf16.msra.mxu0 %v1698_v2  ;;  %v1197_v2 = vld [vmem:[%s2356_s24] sm:$0xff] }
 0x417   :  { %915 = vmatpush.bf16.msrb.mxu2 %v1504_v20  ;;  %v768_v20 = vperm.slane %v762_v17, 1 }
 0x418   :  { %930 = vmatpush.bf16.msrb.mxu3 %v1484_v41  ;;  %v769_v41 = vperm.slane %v763_v33, 1 }
 0x41b   :  { %916 = vmatpush.bf16.msrb.mxu2 %v1492_v32 }
 0x41c   :  { %931 = vmatpush.bf16.msrb.mxu3 %v1472_v48 }
 0x41f   :  { %917 = vmatpush.bf16.msrb.mxu2 %v1480_v40 }
 0x423   :  { %918 = vmatpush.bf16.msrb.mxu2 %v1468_v47 }
 0x474   :  { %v491_v24 = vpop.xlane.xlu2 %490 }
 0x475   :  { %v492_v30 = vmul.f32 %v491_v24, %v2258_v8 }
 0x477   :  { %v493_v37 = vadd.f32 1e-05, %v492_v30 }
 0x479   :  { %1733 = vrsqrt.f32 %v493_v37  ;;  %vm500_vm8 = vweird.f32 %v493_v37 }
 0x47f   :  { %v1734_v49 = vpop.eup %1733 }
 0x480   :  { %v495_v50 = vmul.f32 %v1734_v49, %v493_v37  ;;  %vm501_vm7 = vweird.f32 %v1734_v49 }
 0x481   :  { %vm502_vm9 = vmor %vm500_vm8, %vm501_vm7  ;;  %vm1198_vm8 = vcmp.gt.f32.partialorder %v1197_v2, 0.0 }
 0x482   :  { %v496_v51 = vmul.f32 %v1734_v49, %v495_v50 }
 0x484   :  { %v497_v52 = vmul.f32 0.5, %v496_v51 }
 0x486   :  { %v498_v53 = vsub.f32 1.5, %v497_v52  ;;  %v907_v62 = vpop.f32.mrf.mxu1 }
 0x487   :  { %v908_v6 = vadd.f32 %v907_v62, %v767_v4 }
 0x488   :  { %v499_v54 = vmul.f32 %v1734_v49, %v498_v53 }
 0x48a   :  { %v503_v56 = vsel %vm502_vm9, %v1734_v49, %v499_v54  ;;  %vm1200_vm9 = vcmask 64512  }
 0x48b   :  { %v504_v57 = vmul.f32 %v503_v56, %v2274_v45 }
 0x48d   :  { %v506_v59 = vmul.f32 %v505_v55, %v504_v57 }
 0x48e   :  { %v909_v63 = vpop.f32.mrf.mxu1 }
 0x48f   :  { %v508_v60 = vadd.f32 %v507_v58, %v506_v59 }
 0x491   :  { %v518_v61 = vpack.c.bf16 %v508_v60, %v508_v60 }
 0x493   :  { %697 = vmatmul.bf16.vlgmr.msra.gmra.mxu2 %v518_v61  ;;  %710 = vmatmul.bf16.vlgmr.msra.gmra.mxu3 %v518_v61 }
 0x494   :  { %723 = vmatmul.bf16.vlgmr.msrb.gmra.mxu0 %v518_v61 }
 0x4a3   :  { %919 = vmatmul.bf16.vlgmr.msrb.gmra.mxu2 %v728_v31  ;;  %932 = vmatmul.bf16.vlgmr.msrb.gmra.mxu3 %v728_v31 }
 0x511   :  { %v724_v3 = vpop.f32.mrf.mxu0 }
 0x512   :  { %v725_v50 = vadd.f32 %v724_v3, %v560_v46  ;;  %v1702_v46 = vld [vmem:[%s264_s12 + $0x18] sm:$0xff] }
 0x516   :  { %v698_v45 = vpop.f32.mrf.mxu2  ;;  %v711_v9 = vpop.f32.mrf.mxu3 }
 0x517   :  { %v699_v7 = vadd.f32 %v698_v45, %v558_v5  ;;  %v712_v24 = vadd.f32 %v711_v9, %v559_v19  ;;  %v1697_v45 = vld [vmem:[#allocation16 + $0x30] sm:$0xff]  ;;  %v1696_v9 = vld [vmem:[#allocation16 + $0x28] sm:$0xff] }
 0x518   :  { %1078 = vmatpush.bf16.msra.mxu0 %v1697_v45 }
 0x519   :  { %v937_v10 = vadd.f32 %v908_v6, %v699_v7  ;;  %v726_v11 = vpop.f32.mrf.mxu0  ;;  %v1695_v7 = vld [vmem:[#allocation16 + $0x20] sm:$0xff] }
 0x51a   :  { %v1692_v11 = vld [vmem:[#allocation16 + $0x8] sm:$0xff] }
 0x51b   :  { %v1557_v12 = vmul.f32 -1.442695, %v937_v10  ;;  %v1694_v10 = vld [vmem:[#allocation16 + $0x18] sm:$0xff] }
 0x51c   :  { %1079 = vmatpush.bf16.msra.mxu0 %v1696_v9  ;;  %v1214_v9 = vlaneseq }
 0x51d   :  { %1735 = vpow2.f32 %v1557_v12  ;;  %v1691_v12 = vld [vmem:[#allocation16] sm:$0xff] }
 0x51e   :  { %v700_v13 = vpop.f32.mrf.mxu2  ;;  %v713_v14 = vpop.f32.mrf.mxu3 }
 0x520   :  { %1080 = vmatpush.bf16.msra.mxu0 %v1695_v7  ;;  %v1215_v7 = vand.u32 127, %v1214_v9 }
 0x523   :  { %v1736_v18 = vpop.eup %1735 }
 0x524   :  { %v941_v21 = vadd.f32 1.0, %v1736_v18  ;;  %1081 = vmatpush.bf16.msra.mxu0 %v1694_v10 }
 0x526   :  { %1737 = vrcp.f32 %v941_v21  ;;  %v920_v22 = vpop.f32.mrf.mxu2  ;;  %v933_v23 = vpop.f32.mrf.mxu3  ;;  %v953_v35 = vand.u32 2147483648, %v941_v21  ;;  %v951_v36 = vand.u32 2147483647, %v941_v21  ;;  %vm947_vm11 = vweird.f32 %v941_v21 }
 0x527   :  { %v921_v25 = vadd.f32 %v920_v22, %v768_v20  ;;  %v934_v47 = vadd.f32 %v933_v23, %v769_v41  ;;  %v985_v22 = vld [vmem:[#allocation15] sm:$0x3] }
 0x528   :  { %v954_v43 = vor.u32 1.1754944e-38, %v953_v35  ;;  %vm952_vm13 = vcmp.eq.f32.partialorder %v951_v36, 8.507059e+37 }
 0x529   :  { %v957_v26 = vadd.f32 %v921_v25, %v712_v24  ;;  %v1006_v24 = vperm.slane %v985_v22, 0 }
 0x52b   :  { %v1558_v27 = vmul.f32 -1.442695, %v957_v26 }
 0x52c   :  { %v1738_v28 = vpop.eup %1737 }
 0x52d   :  { %1739 = vpow2.f32 %v1558_v27  ;;  %v943_v29 = vmul.f32 %v1738_v28, %v941_v21  ;;  %vm948_vm10 = vweird.f32 %v1738_v28  ;;  %v1008_v27 = vperm.slane %v985_v22, 1 }
 0x52e   :  { %v922_v30 = vpop.f32.mrf.mxu2  ;;  %v935_v31 = vpop.f32.mrf.mxu3  ;;  %vm949_vm12 = vmor %vm947_vm11, %vm948_vm10 }
 0x52f   :  { %v944_v32 = vsub.f32 1.0, %v943_v29  ;;  %v1010_v31 = vld [vmem:[#allocation18] sm:$0x7] }
 0x531   :  { %v945_v34 = vmul.f32 %v1738_v28, %v944_v32  ;;  %v1028_v32 = vperm.slane %v1010_v31, 0 }
 0x533   :  { %v1740_v37 = vpop.eup %1739  ;;  %v946_v38 = vadd.f32 %v1738_v28, %v945_v34 }
 0x534   :  { %v961_v40 = vadd.f32 1.0, %v1740_v37  ;;  %v1706_v37 = vld [vmem:[%s264_s12 + $0x38] sm:$0xff] }
 0x535   :  { %v950_v42 = vsel %vm949_vm12, %v1738_v28, %v946_v38  ;;  %1184 = vmatpush.bf16.msra.mxu1 %v1706_v37  ;;  %vm1233_vm12 = vcmask 7168  }
 0x536   :  { %1741 = vrcp.f32 %v961_v40  ;;  %v955_v44 = vsel %vm952_vm13, %v954_v43, %v950_v42  ;;  %v973_v54 = vand.u32 2147483648, %v961_v40  ;;  %v971_v56 = vand.u32 2147483647, %v961_v40  ;;  %v1705_v42 = vld [vmem:[%s264_s12 + $0x30] sm:$0xff]  ;;  %v1704_v43 = vld [vmem:[%s264_s12 + $0x28] sm:$0xff] }
 0x537   :  { %v977_v48 = vmul.f32 %v955_v44, %v934_v47  ;;  %vm967_vm15 = vweird.f32 %v961_v40  ;;  %v1703_v44 = vld [vmem:[%s264_s12 + $0x20] sm:$0xff]  ;;  %v1701_v47 = vld [vmem:[%s264_s12 + $0x10] sm:$0xff] }
 0x538   :  { %v974_v58 = vor.u32 1.1754944e-38, %v973_v54  ;;  %vm972_vm1 = vcmp.eq.f32.partialorder %v971_v56, 8.507059e+37 }
 0x539   :  { %v978_v52 = vadd.f32 %v977_v48, %v725_v50  ;;  %1185 = vmatpush.bf16.msra.mxu1 %v1705_v42  ;;  %v1700_v48 = vld [vmem:[%s264_s12 + $0x8] sm:$0xff] }
 0x53b   :  { %1743 = vtanh.f32 %v978_v52 }
 0x53c   :  { %v1742_v49 = vpop.eup %1741 }
 0x53d   :  { %v963_v51 = vmul.f32 %v1742_v49, %v961_v40  ;;  %vm968_vm14 = vweird.f32 %v1742_v49  ;;  %1186 = vmatpush.bf16.msra.mxu1 %v1704_v43 }
 0x53e   :  { %vm969_vm0 = vmor %vm967_vm15, %vm968_vm14 }
 0x53f   :  { %v964_v53 = vsub.f32 1.0, %v963_v51 }
 0x541   :  { %v965_v55 = vmul.f32 %v1742_v49, %v964_v53  ;;  %v1744_v62 = vpop.eup %1743  ;;  %1187 = vmatpush.bf16.msra.mxu1 %v1703_v44 }
 0x543   :  { %v966_v57 = vadd.f32 %v1742_v49, %v965_v55 }
 0x545   :  { %v970_v59 = vsel %vm969_vm0, %v1742_v49, %v966_v57  ;;  %1188 = vmatpush.bf16.msra.mxu1 %v1702_v46  ;;  %v1699_v49 = vld [vmem:[%s264_s12] sm:$0xff] }
 0x546   :  { %v975_v60 = vsel %vm972_vm1, %v974_v58, %v970_v59  ;;  %v1111_v59 = vperm.slane %v1010_v31, 1 }
 0x547   :  { %v980_v61 = vsub.f32 1.0, %v975_v60  ;;  %v982_v0 = vmul.f32 %v975_v60, %v2281_v16  ;;  %v1693_v16 = vld [vmem:[#allocation16 + $0x10] sm:$0xff] }
 0x548   :  { %1082 = vmatpush.bf16.msra.mxu0 %v1693_v16 }
 0x549   :  { %v981_v63 = vmul.f32 %v1744_v62, %v980_v61  ;;  %1189 = vmatpush.bf16.msra.mxu1 %v1701_v47  ;;  %v1113_v61 = vperm.slane %v1010_v31, 2 }
 0x54b   :  { %v983_v1 = vadd.f32 %v982_v0, %v981_v63 }
 0x54c   :  { %1083 = vmatpush.bf16.msra.mxu0 %v1692_v11 }
 0x54d   :  { %986 = vadd.xlane.f32.xlu1 %v983_v1  ;;  %984 = vst [vmem:[#allocation21] sm:$0xff] %v983_v1  ;;  %1190 = vmatpush.bf16.msra.mxu1 %v1700_v48 }
 0x54e   :  { %1255 = dma.vmem_to_hbm [thread:$0]  %s1251_s21, 128, %s1253_s26, [#allocation6]  }
 0x550   :  { %1084 = vmatpush.bf16.msra.mxu0 %v1691_v12 }
 0x551   :  { %1191 = vmatpush.bf16.msra.mxu1 %v1699_v49 }
 0x5c0   :  { %v987_v3 = vpop.xlane.xlu1 %986 }
 0x5c1   :  { %v988_v4 = vmul.f32 %v987_v3, %v2258_v8 }
 0x5c3   :  { %v989_v5 = vsub.f32 %v983_v1, %v988_v4 }
 0x5c5   :  { %v990_v6 = vmul.f32 %v989_v5, %v989_v5 }
 0x5c7   :  { %991 = vadd.xlane.f32.xlu2 %v990_v6 }
 0x63a   :  { %v992_v13 = vpop.xlane.xlu2 %991 }
 0x63b   :  { %v993_v14 = vmul.f32 %v992_v13, %v2258_v8 }
 0x63d   :  { %v994_v15 = vadd.f32 1e-05, %v993_v14 }
 0x63f   :  { %1745 = vrsqrt.f32 %v994_v15  ;;  %vm1001_vm3 = vweird.f32 %v994_v15 }
 0x645   :  { %v1746_v17 = vpop.eup %1745 }
 0x646   :  { %v996_v18 = vmul.f32 %v1746_v17, %v994_v15  ;;  %vm1002_vm2 = vweird.f32 %v1746_v17 }
 0x647   :  { %vm1003_vm4 = vmor %vm1001_vm3, %vm1002_vm2 }
 0x648   :  { %v997_v19 = vmul.f32 %v1746_v17, %v996_v18 }
 0x64a   :  { %v998_v20 = vmul.f32 0.5, %v997_v19 }
 0x64c   :  { %v999_v21 = vsub.f32 1.5, %v998_v20 }
 0x64e   :  { %v1000_v23 = vmul.f32 %v1746_v17, %v999_v21 }
 0x650   :  { %v1004_v25 = vsel %vm1003_vm4, %v1746_v17, %v1000_v23 }
 0x651   :  { %v1005_v26 = vmul.f32 %v1004_v25, %v989_v5 }
 0x653   :  { %v1007_v28 = vmul.f32 %v1006_v24, %v1005_v26 }
 0x655   :  { %v1009_v29 = vadd.f32 %v1008_v27, %v1007_v28 }
 0x657   :  { %v1011_v30 = vpack.c.bf16 %v1009_v29, %v1009_v29 }
 0x659   :  { %1085 = vmatmul.bf16.vlgmr.msra.gmra.mxu0 %v1011_v30 }
 0x6d6   :  { %v1086_v33 = vpop.f32.mrf.mxu0 }
 0x6d7   :  { %v1087_v34 = vadd.f32 %v1086_v33, %v1028_v32 }
 0x6d9   :  { %v1090_v35 = vmax.f32 %v1087_v34, 0.0 }
 0x6db   :  { %1091 = vadd.xlane.f32.xlu1 %v1090_v35 }
 0x6de   :  { %v1088_v36 = vpop.f32.mrf.mxu0 }
 0x74e   :  { %v1092_v38 = vpop.xlane.xlu1 %1091 }
 0x74f   :  { %v1093_v39 = vmul.f32 %v1092_v38, %v2258_v8 }
 0x751   :  { %v1094_v40 = vsub.f32 %v1090_v35, %v1093_v39 }
 0x753   :  { %v1095_v41 = vmul.f32 %v1094_v40, %v1094_v40 }
 0x755   :  { %1096 = vadd.xlane.f32.xlu2 %v1095_v41 }
 0x7c8   :  { %v1097_v50 = vpop.xlane.xlu2 %1096 }
 0x7c9   :  { %v1098_v51 = vmul.f32 %v1097_v50, %v2258_v8  ;;  %v1726_v8 = vld [vmem:[#allocation19] ss:$0 sm:$0xff] }
 0x7cb   :  { %v1099_v52 = vadd.f32 1e-05, %v1098_v51 }
 0x7cd   :  { %1747 = vrsqrt.f32 %v1099_v52  ;;  %vm1106_vm6 = vweird.f32 %v1099_v52 }
 0x7d3   :  { %v1748_v53 = vpop.eup %1747 }
 0x7d4   :  { %v1101_v54 = vmul.f32 %v1748_v53, %v1099_v52  ;;  %vm1107_vm5 = vweird.f32 %v1748_v53 }
 0x7d5   :  { %vm1108_vm7 = vmor %vm1106_vm6, %vm1107_vm5 }
 0x7d6   :  { %v1102_v55 = vmul.f32 %v1748_v53, %v1101_v54 }
 0x7d8   :  { %v1103_v56 = vmul.f32 0.5, %v1102_v55 }
 0x7da   :  { %v1104_v57 = vsub.f32 1.5, %v1103_v56 }
 0x7dc   :  { %v1105_v58 = vmul.f32 %v1748_v53, %v1104_v57 }
 0x7de   :  { %v1109_v60 = vsel %vm1108_vm7, %v1748_v53, %v1105_v58 }
 0x7df   :  { %v1110_v62 = vmul.f32 %v1109_v60, %v1094_v40 }
 0x7e1   :  { %v1112_v63 = vmul.f32 %v1111_v59, %v1110_v62 }
 0x7e3   :  { %v1114_v0 = vadd.f32 %v1113_v61, %v1112_v63 }
 0x7e5   :  { %v1116_v1 = vpack.c.bf16 %v1114_v0, %v1114_v0 }
 0x7e7   :  { %1192 = vmatmul.bf16.vlgmr.msra.gmra.mxu1 %v1116_v1 }
 0x864   :  { %v1193_v3 = vpop.f32.mrf.mxu1 }
 0x865   :  { %v1194_v4 = vadd.f32 %v1726_v8, %v1193_v3 }
 0x867   :  { %v1199_v5 = vsel %vm1198_vm8, %v1194_v4, -1e+10 }
 0x868   :  { %v1201_v6 = vsel %vm1200_vm9, %v1199_v5, -inf }
 0x869   :  { %1202 = vmax.xlane.f32.xlu1 %v1201_v6 }
 0x86c   :  { %v1195_v45 = vpop.f32.mrf.mxu1 }
 0x8dc   :  { %v1203_v10 = vpop.xlane.xlu1 %1202 }
 0x8dd   :  { %v1204_v16 = vsub.f32 %v1199_v5, %v1203_v10  ;;  %vm1216_vm10 = vcmp.ge.f32.partialorder %v1199_v5, %v1203_v10 }
 0x8de   :  { %v1217_v11 = vsel %vm1216_vm10, %v1215_v7, 8 }
 0x8df   :  { %v1205_v12 = vmul.f32 1.442695, %v1204_v16  ;;  %v1218_v13 = vsel %vm1200_vm9, %v1217_v11, 2147483647 }
 0x8e0   :  { %v1220_v14 = vshra.s32 %v1218_v13, 16  ;;  %v1219_v19 = vand.u32 65535, %v1218_v13 }
 0x8e1   :  { %1749 = vpow2.f32 %v1205_v12 }
 0x8e2   :  { %v1222_v15 = vcvt.s32.f32 %v1220_v14  ;;  %v1221_v21 = vcvt.s32.f32 %v1219_v19 }
 0x8e4   :  { %1223 = vmin.xlane.f32.xlu2 %v1222_v15 }
 0x8e7   :  { %v1750_v17 = vpop.eup %1749 }
 0x8e8   :  { %v1207_v18 = vsel %vm1200_vm9, %v1750_v17, 0.0 }
 0x8e9   :  { %1208 = vadd.xlane.f32.xlu1 %v1207_v18 }
 0x957   :  { %v1224_v20 = vpop.xlane.xlu2 %1223 }
 0x958   :  { %vm1225_vm11 = vcmp.eq.f32.partialorder %v1222_v15, %v1224_v20  ;;  %v1230_v26 = vcvt.f32.s32 %v1224_v20 }
 0x959   :  { %v1226_v22 = vsel %vm1225_vm11, %v1221_v21, inf }
 0x95a   :  { %1227 = vmin.xlane.f32.xlu2 %v1226_v22  ;;  %v1231_v29 = vshll.u32 %v1230_v26, 16 }
 0x95c   :  { %v1209_v23 = vpop.xlane.xlu1 %1208 }
 0x95d   :  { %1751 = vlog2.f32 %v1209_v23 }
 0x963   :  { %v1752_v24 = vpop.eup %1751 }
 0x964   :  { %v1211_v25 = vmul.f32 0.6931472, %v1752_v24 }
 0x966   :  { %v1212_v27 = vadd.f32 %v1211_v25, %v1203_v10 }
 0x968   :  { %v1213_v32 = vsub.f32 %v1199_v5, %v1212_v27 }
 0x9cd   :  { %v1228_v28 = vpop.xlane.xlu2 %1227 }
 0x9ce   :  { %v1229_v30 = vcvt.f32.s32 %v1228_v28 }
 0x9d0   :  { %v1232_v31 = vadd.s32 %v1231_v29, %v1229_v30 }
 0x9d2   :  { %vm1235_vm13 = vcmp.eq.s32.totalorder %v1215_v7, %v1232_v31  ;;  %1234 = vst.msk [vmem:[%s2357_s9] sm:$0xff] %vm1233_vm12, %v1232_v31 }
 0x9d3   :  { %v1236_v33 = vsel %vm1235_vm13, %v1213_v32, 0.0 }
 0x9d4   :  { %v1237_v34 = vsel %vm1200_vm9, %v1236_v33, 0.0 }
 0x9d5   :  { %1238 = vadd.xlane.f32.xlu1 %v1237_v34 }
 0xa48   :  { %v1239_v35 = vpop.xlane.xlu1 %1238 }
 0xa49   :  { %1240 = vst.msk [vmem:[%s2358_s2] sm:$0xff] %vm1233_vm12, %v1239_v35 }
 0xa4a   :  { %2029 = dma.done.wait [#allocation6], 128  }
 0xa4b   :  { %2030 = vsyncadd [#allocation6], 4294967168 }
 0xa4c   :  { %1264 = vsyncpa [#allocation5], 1 }
 0xa4d   :  { %1265 = vsyncpa [#allocation8], 1 }
 0xa4e   :  { %1266 = vsyncpa [#allocation11], 1 }
 0xa4f   :  { %1267 = vsyncpa [#allocation14], 1 }
 0xa50   :  { %1268 = vsyncpa [#allocation17], 1 }
 0xa51   :  { %1269 = vsyncpa [#allocation20], 1 }
 0xa52   :  { %1270 = vsyncpa [#allocation6], 1 }

</bundles_post_ra>
